<compile_context>
chip_gen: v6e
topology: v6e:2x2x1
jax: 0.10.0
libtpu: 0.0.40
codegen_flags: <defaults>
</compile_context>

<pallas_src>
import math
import numpy as np
import jax
import jax.numpy as jnp
from jax import lax
from jax.experimental import pallas as pl
from jax.experimental.pallas import tpu as pltpu


# ---------------------------------------------------------------------------
# Host-side wrapper (NCHW in/out, matching the PyTorch module)
# ---------------------------------------------------------------------------
def up_forward(x1, x2, uh, uw, w1, s1, b1, w2, s2, b2):
    """x1: [N,C1,H1,W1], x2: [N,C2,H2,W2], w1/w2: OIHW. Returns [N,Cout,H2,W2]."""
    N, C1, H1, W1 = x1.shape
    N2, C2, H2, W2 = x2.shape
    assert N2 == N
    Hu, Wu = uh.shape[0], uw.shape[0]          # upsampled spatial size (2x here)
    Cmid, Cin = w1.shape[0], w1.shape[1]
    Cout = w2.shape[0]
    diffY, diffX = H2 - Hu, W2 - Wu
    assert Cin == C1 + C2 and diffY >= 0 and diffX >= 0

    Hp, Wp = H2 + 2, W2 + 2                    # +1 conv halo on each side
    HpWp = Hp * Wp
    NPW = N * HpWp                             # lane-dense flat column axis (n,yp,xp)
    MARG = Wp + 1                              # >= max |3x3 tap offset| in flat coords
    NPWe = NPW + 2 * MARG

    bf16, f32 = jnp.bfloat16, jnp.float32

    # ---------------- host-side packing (layout plumbing only) ----------------
    # x2: conv-halo pad -> flat lane-dense (C2, N*Hp*Wp) + zero margins
    x2p = jnp.pad(x2, ((0, 0), (0, 0), (1, 1), (1, 1)))
    x2e = jnp.pad(x2p.transpose(1, 0, 2, 3).reshape(C2, NPW),
                  ((0, 0), (MARG, MARG))).astype(bf16)

    # x1 flattened per image for the fused upsample matmul
    x1f = x1.reshape(N, C1, H1 * W1).astype(bf16)

    # fused (bilinear upsample + center pad + conv-halo pad) spatial operator:
    #   B[h*W1+w, hp*Wp+wp] = uh_pad[hp,h] * uw_pad[wp,w]   (channel-count free)
    yo, xo = 1 + diffY // 2, 1 + diffX // 2
    uh_pad = np.zeros((Hp, H1), np.float32)
    uh_pad[yo:yo + Hu, :] = np.asarray(uh, np.float32)
    uwT_pad = np.zeros((W1, Wp), np.float32)
    uwT_pad[:, xo:xo + Wu] = np.asarray(uw, np.float32).T
    upmat = jnp.asarray(np.kron(uh_pad.T, uwT_pad), bf16)      # (H1*W1, Hp*Wp)

    # conv weights packed for ONE im2col matmul each: [Cout, 9*Cin], tap-major
    w1p = jnp.transpose(w1, (0, 2, 3, 1)).reshape(Cmid, 9 * Cin).astype(bf16)
    w2p = jnp.transpose(w2, (0, 2, 3, 1)).reshape(Cout, 9 * Cmid).astype(bf16)
    s1c, b1c = s1.reshape(Cmid, 1).astype(f32), b1.reshape(Cmid, 1).astype(f32)
    s2c, b2c = s2.reshape(Cout, 1).astype(f32), b2.reshape(Cout, 1).astype(f32)

    # interior mask: re-zeroes conv1's halo columns so they act as conv2's pad
    mnp = np.zeros((N, Hp, Wp), np.float32)
    mnp[:, 1:1 + H2, 1:1 + W2] = 1.0
    mask = jnp.asarray(mnp.reshape(1, NPW))

    # static flat tap offsets (origin shifted by MARG so every tap is a plain
    # in-bounds full-width slice of the margin-extended buffers)
    taps = [MARG + (ky - 1) * Wp + (kx - 1) for ky in range(3) for kx in range(3)]

    # ------------------------------- kernel ----------------------------------
    def kernel(x1_ref, x2e_ref, up_ref, w1_ref, s1_ref, b1_ref,
               w2_ref, s2_ref, b2_ref, mask_ref, out_ref,
               xue_ref, y1e_ref, col1_ref, col2_ref):
        # one-time zeroing of the margin-extended scratch buffers
        xue_ref[...] = jnp.zeros_like(xue_ref)
        y1e_ref[...] = jnp.zeros_like(y1e_ref)

        # ---- bilinear upsample (align_corners=True) + center pad + conv halo:
        #      one bf16 MXU matmul per batch element, written directly into the
        #      lane-dense flat layout (no per-tap reshapes, no kron over C1).
        for n in range(N):
            xu = jnp.dot(x1_ref[n], up_ref[...],
                         preferred_element_type=jnp.float32)        # (C1, Hp*Wp)
            xue_ref[:, MARG + n * HpWp: MARG + (n + 1) * HpWp] = xu.astype(bf16)

        # ---- conv1 (+ fused F.pad / channel concat) as ONE matmul:
        #      im2col rows = (tap, [x2 channels | upsampled-x1 channels])
        for k, s in enumerate(taps):
            col1_ref[k * Cin: k * Cin + C2, :] = x2e_ref[:, s: s + NPW]
            col1_ref[k * Cin + C2: (k + 1) * Cin, :] = xue_ref[:, s: s + NPW]
        acc1 = jnp.dot(w1_ref[...], col1_ref[...],
                       preferred_element_type=jnp.float32)           # (Cmid, NPW)
        # folded eval-mode BN + ReLU; mask zeroes the halo columns (conv2's pad)
        y1 = jnp.maximum(acc1 * s1_ref[...] + b1_ref[...], 0.0) * mask_ref[...]
        y1e_ref[:, MARG: MARG + NPW] = y1.astype(bf16)

        # ---- conv2 as ONE matmul
        for k, s in enumerate(taps):
            col2_ref[k * Cmid: (k + 1) * Cmid, :] = y1e_ref[:, s: s + NPW]
        acc2 = jnp.dot(w2_ref[...], col2_ref[...],
                       preferred_element_type=jnp.float32)           # (Cout, NPW)
        out_ref[...] = jnp.maximum(acc2 * s2_ref[...] + b2_ref[...], 0.0)

    vspec = pl.BlockSpec(memory_space=pltpu.MemorySpace.VMEM)
    out_flat = pl.pallas_call(
        kernel,
        out_shape=jax.ShapeDtypeStruct((Cout, NPW), jnp.float32),    # lane-dense
        in_specs=[vspec] * 10,
        out_specs=vspec,
        scratch_shapes=[
            pltpu.VMEM((C1, NPWe), bf16),        # upsampled x1, padded + margins
            pltpu.VMEM((Cmid, NPWe), bf16),      # conv1 output, padded + margins
            pltpu.VMEM((9 * Cin, NPW), bf16),    # im2col for conv1
            pltpu.VMEM((9 * Cmid, NPW), bf16),   # im2col for conv2
        ],
    )(x1f, x2e, upmat, w1p, s1c, b1c, w2p, s2c, b2c, mask)

    # layout plumbing back to NCHW: drop the conv halo, (Cout,n,H,W) -> (N,Cout,H,W)
    return (out_flat.reshape(Cout, N, Hp, Wp)[:, :, 1:1 + H2, 1:1 + W2]
            .transpose(1, 0, 2, 3))


# ---------------------------------------------------------------------------
# Helpers: bilinear (align_corners=True) matrix, BN fold, pure-JAX reference
# ---------------------------------------------------------------------------
def bilinear_matrix(n_in, n_out):
    m = np.zeros((n_out, n_in), dtype=np.float32)
    if n_out == 1:
        m[0, 0] = 1.0
        return m
    scale = (n_in - 1) / (n_out - 1)
    for i in range(n_out):
        src = i * scale
        i0 = int(math.floor(src))
        i1 = min(i0 + 1, n_in - 1)
        w = src - i0
        m[i, i0] += 1.0 - w
        m[i, i1] += w
    return m


def fold_bn(gamma, beta, mean, var, eps=1e-5):
    scale = gamma / np.sqrt(var + eps)
    bias = beta - mean * scale
    return scale.astype(np.float32), bias.astype(np.float32)


def ref_forward(x1, x2, uh, uw, w1, s1, b1, w2, s2, b2):
    """Pure-JAX/XLA NCHW reference with matching bf16 operand quantization."""
    bf16, f32 = jnp.bfloat16, jnp.float32
    t = jnp.einsum('ow,nchw->ncho', uw.astype(bf16), x1.astype(bf16),
                   preferred_element_type=f32)
    xu = jnp.einsum('ah,ncho->ncao', uh.astype(bf16), t.astype(bf16),
                    preferred_element_type=f32)
    diffY = x2.shape[2] - xu.shape[2]
    diffX = x2.shape[3] - xu.shape[3]
    xu = jnp.pad(xu, ((0, 0), (0, 0),
                      (diffY // 2, diffY - diffY // 2),
                      (diffX // 2, diffX - diffX // 2)))
    x = jnp.concatenate([x2, xu], axis=1)
    dn = ('NCHW', 'OIHW', 'NCHW')
    y = lax.conv_general_dilated(x.astype(bf16), w1.astype(bf16), (1, 1), 'SAME',
                                 dimension_numbers=dn, preferred_element_type=f32)
    y = jnp.maximum(y * s1[None, :, None, None] + b1[None, :, None, None], 0.0)
    y = lax.conv_general_dilated(y.astype(bf16), w2.astype(bf16), (1, 1), 'SAME',
                                 dimension_numbers=dn, preferred_element_type=f32)
    y = jnp.maximum(y * s2[None, :, None, None] + b2[None, :, None, None], 0.0)
    return y


# ---------------------------------------------------------------------------
if __name__ == "__main__":
    # Up(in_planes=8, out_planes=4, bilinear=True):
    #   x1 (decoder feature): N=2, C1=4, 8x8 -> upsampled to 16x16
    #   x2 (skip connection): N=2, C2=4, 16x16
    #   concat channels = 8; mid = in_planes//2 = 4; out = 4.
    N, C1, H1, W1 = 2, 4, 8, 8
    C2, H2, W2 = 4, 16, 16
    in_planes, out_planes = C1 + C2, 4
    mid_planes = in_planes // 2

    key = jax.random.PRNGKey(0)
    k1, k2, k3, k4 = jax.random.split(key, 4)

    x1 = jax.random.normal(k1, (N, C1, H1, W1), dtype=jnp.float32)
    x2 = jax.random.normal(k2, (N, C2, H2, W2), dtype=jnp.float32)

    w1 = (jax.random.normal(k3, (mid_planes, in_planes, 3, 3), dtype=jnp.float32)
          * (1.0 / math.sqrt(9 * in_planes)))
    w2 = (jax.random.normal(k4, (out_planes, mid_planes, 3, 3), dtype=jnp.float32)
          * (1.0 / math.sqrt(9 * mid_planes)))

    # eval-mode BatchNorm folded into per-channel scale/bias (deterministic)
    g1 = 1.0 + 0.1 * np.arange(mid_planes, dtype=np.float32)
    be1 = 0.05 * np.arange(mid_planes, dtype=np.float32)
    m1 = 0.01 * np.arange(mid_planes, dtype=np.float32)
    v1 = 1.0 + 0.02 * np.arange(mid_planes, dtype=np.float32)
    s1, b1 = fold_bn(g1, be1, m1, v1)

    g2 = 1.0 + 0.1 * np.arange(out_planes, dtype=np.float32)
    be2 = 0.05 * np.arange(out_planes, dtype=np.float32)
    m2 = 0.01 * np.arange(out_planes, dtype=np.float32)
    v2 = 1.0 + 0.02 * np.arange(out_planes, dtype=np.float32)
    s2, b2 = fold_bn(g2, be2, m2, v2)

    uh = jnp.asarray(bilinear_matrix(H1, 2 * H1))   # align_corners=True, scale 2
    uw = jnp.asarray(bilinear_matrix(W1, 2 * W1))
    s1j, b1j = jnp.asarray(s1), jnp.asarray(b1)
    s2j, b2j = jnp.asarray(s2), jnp.asarray(b2)

    out = up_forward(x1, x2, uh, uw, w1, s1j, b1j, w2, s2j, b2j)
    out = jax.block_until_ready(out)

    ref = ref_forward(x1, x2, uh, uw, w1, s1j, b1j, w2, s2j, b2j)
    ref = jax.block_until_ready(ref)

    # bf16 MXU operands in both paths -> compare with a bf16-appropriate tolerance
    np.testing.assert_allclose(np.asarray(out), np.asarray(ref),
                               rtol=2e-2, atol=2e-2)
    print("KERNEL_OK")
</pallas_src>

<mosaic_0001>
module attributes {stable_mosaic.version = 11 : i64} {
  func.func @kernel(%arg0: memref<2x4x64xbf16, #tpu.memory_space<vmem>>, %arg1: memref<4x686xbf16, #tpu.memory_space<vmem>>, %arg2: memref<64x324xbf16, #tpu.memory_space<vmem>>, %arg3: memref<4x72xbf16, #tpu.memory_space<vmem>>, %arg4: memref<4x1xf32, #tpu.memory_space<vmem>>, %arg5: memref<4x1xf32, #tpu.memory_space<vmem>>, %arg6: memref<4x36xbf16, #tpu.memory_space<vmem>>, %arg7: memref<4x1xf32, #tpu.memory_space<vmem>>, %arg8: memref<4x1xf32, #tpu.memory_space<vmem>>, %arg9: memref<1x648xf32, #tpu.memory_space<vmem>>, %arg10: memref<4x648xf32, #tpu.memory_space<vmem>>, %arg11: memref<4x686xbf16, #tpu.memory_space<vmem>>, %arg12: memref<4x686xbf16, #tpu.memory_space<vmem>>, %arg13: memref<72x648xbf16, #tpu.memory_space<vmem>>, %arg14: memref<36x648xbf16, #tpu.memory_space<vmem>>) attributes {dimension_semantics = [], scalar_prefetch = 0 : i64, scratch_operands = 4 : i64, tpu.core_type = #tpu.core_type<tc>} {
    %cst = arith.constant 0.000000e+00 : bf16
    %0 = vector.broadcast %cst : bf16 to vector<4x686xbf16>
    %c0 = arith.constant 0 : index
    %c0_0 = arith.constant 0 : index
    %1 = vector.load %arg11[%c0, %c0_0] : memref<4x686xbf16, #tpu.memory_space<vmem>>, vector<4x686xbf16>
    tpu.vector_store %arg11[%c0, %c0_0], %0 {strides = array<i32>} : memref<4x686xbf16, #tpu.memory_space<vmem>>, vector<4x686xbf16>,
    %cst_1 = arith.constant 0.000000e+00 : bf16
    %2 = vector.broadcast %cst_1 : bf16 to vector<4x686xbf16>
    %c0_2 = arith.constant 0 : index
    %c0_3 = arith.constant 0 : index
    %3 = vector.load %arg12[%c0_2, %c0_3] : memref<4x686xbf16, #tpu.memory_space<vmem>>, vector<4x686xbf16>
    tpu.vector_store %arg12[%c0_2, %c0_3], %2 {strides = array<i32>} : memref<4x686xbf16, #tpu.memory_space<vmem>>, vector<4x686xbf16>,
    %c0_4 = arith.constant 0 : index
    %c0_5 = arith.constant 0 : index
    %c0_6 = arith.constant 0 : index
    %4 = vector.load %arg0[%c0_4, %c0_5, %c0_6] : memref<2x4x64xbf16, #tpu.memory_space<vmem>>, vector<1x4x64xbf16>
    %5 = vector.shape_cast %4 : vector<1x4x64xbf16> to vector<4x64xbf16>
    %c0_7 = arith.constant 0 : index
    %c0_8 = arith.constant 0 : index
    %6 = vector.load %arg2[%c0_7, %c0_8] : memref<64x324xbf16, #tpu.memory_space<vmem>>, vector<64x324xbf16>
    %cst_9 = arith.constant dense<0.000000e+00> : vector<4x324xf32>
    %7 = tpu.matmul %5, %6, %cst_9 {dimension_numbers = #tpu.dot_dimension_numbers<[1], [0], [0], [1], [0, 0, 1, 1], [], []>} : vector<4x64xbf16>, vector<64x324xbf16>, vector<4x324xf32> -> vector<4x324xf32>
    %8 = arith.truncf %7 : vector<4x324xf32> to vector<4x324xbf16>
    %c0_10 = arith.constant 0 : index
    %c19 = arith.constant 19 : index
    %9 = vector.load %arg11[%c0_10, %c19] : memref<4x686xbf16, #tpu.memory_space<vmem>>, vector<4x324xbf16>
    tpu.vector_store %arg11[%c0_10, %c19], %8 {strides = array<i32>} : memref<4x686xbf16, #tpu.memory_space<vmem>>, vector<4x324xbf16>,
    %c1 = arith.constant 1 : index
    %c0_11 = arith.constant 0 : index
    %c0_12 = arith.constant 0 : index
    %10 = vector.load %arg0[%c1, %c0_11, %c0_12] : memref<2x4x64xbf16, #tpu.memory_space<vmem>>, vector<1x4x64xbf16>
    %11 = vector.shape_cast %10 : vector<1x4x64xbf16> to vector<4x64xbf16>
    %c0_13 = arith.constant 0 : index
    %c0_14 = arith.constant 0 : index
    %12 = vector.load %arg2[%c0_13, %c0_14] : memref<64x324xbf16, #tpu.memory_space<vmem>>, vector<64x324xbf16>
    %cst_15 = arith.constant dense<0.000000e+00> : vector<4x324xf32>
    %13 = tpu.matmul %11, %12, %cst_15 {dimension_numbers = #tpu.dot_dimension_numbers<[1], [0], [0], [1], [0, 0, 1, 1], [], []>} : vector<4x64xbf16>, vector<64x324xbf16>, vector<4x324xf32> -> vector<4x324xf32>
    %14 = arith.truncf %13 : vector<4x324xf32> to vector<4x324xbf16>
    %c0_16 = arith.constant 0 : index
    %c343 = arith.constant 343 : index
    %15 = vector.load %arg11[%c0_16, %c343] : memref<4x686xbf16, #tpu.memory_space<vmem>>, vector<4x324xbf16>
    tpu.vector_store %arg11[%c0_16, %c343], %14 {strides = array<i32>} : memref<4x686xbf16, #tpu.memory_space<vmem>>, vector<4x324xbf16>,
    %c0_17 = arith.constant 0 : index
    %c0_18 = arith.constant 0 : index
    %16 = vector.load %arg1[%c0_17, %c0_18] : memref<4x686xbf16, #tpu.memory_space<vmem>>, vector<4x648xbf16>
    %c0_19 = arith.constant 0 : index
    %c0_20 = arith.constant 0 : index
    %17 = vector.load %arg13[%c0_19, %c0_20] : memref<72x648xbf16, #tpu.memory_space<vmem>>, vector<4x648xbf16>
    tpu.vector_store %arg13[%c0_19, %c0_20], %16 {strides = array<i32>} : memref<72x648xbf16, #tpu.memory_space<vmem>>, vector<4x648xbf16>,
    %c0_21 = arith.constant 0 : index
    %c0_22 = arith.constant 0 : index
    %18 = vector.load %arg11[%c0_21, %c0_22] : memref<4x686xbf16, #tpu.memory_space<vmem>>, vector<4x648xbf16>
    %c4 = arith.constant 4 : index
    %c0_23 = arith.constant 0 : index
    %19 = vector.load %arg13[%c4, %c0_23] : memref<72x648xbf16, #tpu.memory_space<vmem>>, vector<4x648xbf16>
    tpu.vector_store %arg13[%c4, %c0_23], %18 {strides = array<i32>} : memref<72x648xbf16, #tpu.memory_space<vmem>>, vector<4x648xbf16>,
    %c0_24 = arith.constant 0 : index
    %c1_25 = arith.constant 1 : index
    %20 = vector.load %arg1[%c0_24, %c1_25] : memref<4x686xbf16, #tpu.memory_space<vmem>>, vector<4x648xbf16>
    %c8 = arith.constant 8 : index
    %c0_26 = arith.constant 0 : index
    %21 = vector.load %arg13[%c8, %c0_26] : memref<72x648xbf16, #tpu.memory_space<vmem>>, vector<4x648xbf16>
    tpu.vector_store %arg13[%c8, %c0_26], %20 {strides = array<i32>} : memref<72x648xbf16, #tpu.memory_space<vmem>>, vector<4x648xbf16>,
    %c0_27 = arith.constant 0 : index
    %c1_28 = arith.constant 1 : index
    %22 = vector.load %arg11[%c0_27, %c1_28] : memref<4x686xbf16, #tpu.memory_space<vmem>>, vector<4x648xbf16>
    %c12 = arith.constant 12 : index
    %c0_29 = arith.constant 0 : index
    %23 = vector.load %arg13[%c12, %c0_29] : memref<72x648xbf16, #tpu.memory_space<vmem>>, vector<4x648xbf16>
    tpu.vector_store %arg13[%c12, %c0_29], %22 {strides = array<i32>} : memref<72x648xbf16, #tpu.memory_space<vmem>>, vector<4x648xbf16>,
    %c0_30 = arith.constant 0 : index
    %c2 = arith.constant 2 : index
    %24 = vector.load %arg1[%c0_30, %c2] : memref<4x686xbf16, #tpu.memory_space<vmem>>, vector<4x648xbf16>
    %c16 = arith.constant 16 : index
    %c0_31 = arith.constant 0 : index
    %25 = vector.load %arg13[%c16, %c0_31] : memref<72x648xbf16, #tpu.memory_space<vmem>>, vector<4x648xbf16>
    tpu.vector_store %arg13[%c16, %c0_31], %24 {strides = array<i32>} : memref<72x648xbf16, #tpu.memory_space<vmem>>, vector<4x648xbf16>,
    %c0_32 = arith.constant 0 : index
    %c2_33 = arith.constant 2 : index
    %26 = vector.load %arg11[%c0_32, %c2_33] : memref<4x686xbf16, #tpu.memory_space<vmem>>, vector<4x648xbf16>
    %c20 = arith.constant 20 : index
    %c0_34 = arith.constant 0 : index
    %27 = vector.load %arg13[%c20, %c0_34] : memref<72x648xbf16, #tpu.memory_space<vmem>>, vector<4x648xbf16>
    tpu.vector_store %arg13[%c20, %c0_34], %26 {strides = array<i32>} : memref<72x648xbf16, #tpu.memory_space<vmem>>, vector<4x648xbf16>,
    %c0_35 = arith.constant 0 : index
    %c18 = arith.constant 18 : index
    %28 = vector.load %arg1[%c0_35, %c18] : memref<4x686xbf16, #tpu.memory_space<vmem>>, vector<4x648xbf16>
    %c24 = arith.constant 24 : index
    %c0_36 = arith.constant 0 : index
    %29 = vector.load %arg13[%c24, %c0_36] : memref<72x648xbf16, #tpu.memory_space<vmem>>, vector<4x648xbf16>
    tpu.vector_store %arg13[%c24, %c0_36], %28 {strides = array<i32>} : memref<72x648xbf16, #tpu.memory_space<vmem>>, vector<4x648xbf16>,
    %c0_37 = arith.constant 0 : index
    %c18_38 = arith.constant 18 : index
    %30 = vector.load %arg11[%c0_37, %c18_38] : memref<4x686xbf16, #tpu.memory_space<vmem>>, vector<4x648xbf16>
    %c28 = arith.constant 28 : index
    %c0_39 = arith.constant 0 : index
    %31 = vector.load %arg13[%c28, %c0_39] : memref<72x648xbf16, #tpu.memory_space<vmem>>, vector<4x648xbf16>
    tpu.vector_store %arg13[%c28, %c0_39], %30 {strides = array<i32>} : memref<72x648xbf16, #tpu.memory_space<vmem>>, vector<4x648xbf16>,
    %c0_40 = arith.constant 0 : index
    %c19_41 = arith.constant 19 : index
    %32 = vector.load %arg1[%c0_40, %c19_41] : memref<4x686xbf16, #tpu.memory_space<vmem>>, vector<4x648xbf16>
    %c32 = arith.constant 32 : index
    %c0_42 = arith.constant 0 : index
    %33 = vector.load %arg13[%c32, %c0_42] : memref<72x648xbf16, #tpu.memory_space<vmem>>, vector<4x648xbf16>
    tpu.vector_store %arg13[%c32, %c0_42], %32 {strides = array<i32>} : memref<72x648xbf16, #tpu.memory_space<vmem>>, vector<4x648xbf16>,
    %c0_43 = arith.constant 0 : index
    %c19_44 = arith.constant 19 : index
    %34 = vector.load %arg11[%c0_43, %c19_44] : memref<4x686xbf16, #tpu.memory_space<vmem>>, vector<4x648xbf16>
    %c36 = arith.constant 36 : index
    %c0_45 = arith.constant 0 : index
    %35 = vector.load %arg13[%c36, %c0_45] : memref<72x648xbf16, #tpu.memory_space<vmem>>, vector<4x648xbf16>
    tpu.vector_store %arg13[%c36, %c0_45], %34 {strides = array<i32>} : memref<72x648xbf16, #tpu.memory_space<vmem>>, vector<4x648xbf16>,
    %c0_46 = arith.constant 0 : index
    %c20_47 = arith.constant 20 : index
    %36 = vector.load %arg1[%c0_46, %c20_47] : memref<4x686xbf16, #tpu.memory_space<vmem>>, vector<4x648xbf16>
    %c40 = arith.constant 40 : index
    %c0_48 = arith.constant 0 : index
    %37 = vector.load %arg13[%c40, %c0_48] : memref<72x648xbf16, #tpu.memory_space<vmem>>, vector<4x648xbf16>
    tpu.vector_store %arg13[%c40, %c0_48], %36 {strides = array<i32>} : memref<72x648xbf16, #tpu.memory_space<vmem>>, vector<4x648xbf16>,
    %c0_49 = arith.constant 0 : index
    %c20_50 = arith.constant 20 : index
    %38 = vector.load %arg11[%c0_49, %c20_50] : memref<4x686xbf16, #tpu.memory_space<vmem>>, vector<4x648xbf16>
    %c44 = arith.constant 44 : index
    %c0_51 = arith.constant 0 : index
    %39 = vector.load %arg13[%c44, %c0_51] : memref<72x648xbf16, #tpu.memory_space<vmem>>, vector<4x648xbf16>
    tpu.vector_store %arg13[%c44, %c0_51], %38 {strides = array<i32>} : memref<72x648xbf16, #tpu.memory_space<vmem>>, vector<4x648xbf16>,
    %c0_52 = arith.constant 0 : index
    %c36_53 = arith.constant 36 : index
    %40 = vector.load %arg1[%c0_52, %c36_53] : memref<4x686xbf16, #tpu.memory_space<vmem>>, vector<4x648xbf16>
    %c48 = arith.constant 48 : index
    %c0_54 = arith.constant 0 : index
    %41 = vector.load %arg13[%c48, %c0_54] : memref<72x648xbf16, #tpu.memory_space<vmem>>, vector<4x648xbf16>
    tpu.vector_store %arg13[%c48, %c0_54], %40 {strides = array<i32>} : memref<72x648xbf16, #tpu.memory_space<vmem>>, vector<4x648xbf16>,
    %c0_55 = arith.constant 0 : index
    %c36_56 = arith.constant 36 : index
    %42 = vector.load %arg11[%c0_55, %c36_56] : memref<4x686xbf16, #tpu.memory_space<vmem>>, vector<4x648xbf16>
    %c52 = arith.constant 52 : index
    %c0_57 = arith.constant 0 : index
    %43 = vector.load %arg13[%c52, %c0_57] : memref<72x648xbf16, #tpu.memory_space<vmem>>, vector<4x648xbf16>
    tpu.vector_store %arg13[%c52, %c0_57], %42 {strides = array<i32>} : memref<72x648xbf16, #tpu.memory_space<vmem>>, vector<4x648xbf16>,
    %c0_58 = arith.constant 0 : index
    %c37 = arith.constant 37 : index
    %44 = vector.load %arg1[%c0_58, %c37] : memref<4x686xbf16, #tpu.memory_space<vmem>>, vector<4x648xbf16>
    %c56 = arith.constant 56 : index
    %c0_59 = arith.constant 0 : index
    %45 = vector.load %arg13[%c56, %c0_59] : memref<72x648xbf16, #tpu.memory_space<vmem>>, vector<4x648xbf16>
    tpu.vector_store %arg13[%c56, %c0_59], %44 {strides = array<i32>} : memref<72x648xbf16, #tpu.memory_space<vmem>>, vector<4x648xbf16>,
    %c0_60 = arith.constant 0 : index
    %c37_61 = arith.constant 37 : index
    %46 = vector.load %arg11[%c0_60, %c37_61] : memref<4x686xbf16, #tpu.memory_space<vmem>>, vector<4x648xbf16>
    %c60 = arith.constant 60 : index
    %c0_62 = arith.constant 0 : index
    %47 = vector.load %arg13[%c60, %c0_62] : memref<72x648xbf16, #tpu.memory_space<vmem>>, vector<4x648xbf16>
    tpu.vector_store %arg13[%c60, %c0_62], %46 {strides = array<i32>} : memref<72x648xbf16, #tpu.memory_space<vmem>>, vector<4x648xbf16>,
    %c0_63 = arith.constant 0 : index
    %c38 = arith.constant 38 : index
    %48 = vector.load %arg1[%c0_63, %c38] : memref<4x686xbf16, #tpu.memory_space<vmem>>, vector<4x648xbf16>
    %c64 = arith.constant 64 : index
    %c0_64 = arith.constant 0 : index
    %49 = vector.load %arg13[%c64, %c0_64] : memref<72x648xbf16, #tpu.memory_space<vmem>>, vector<4x648xbf16>
    tpu.vector_store %arg13[%c64, %c0_64], %48 {strides = array<i32>} : memref<72x648xbf16, #tpu.memory_space<vmem>>, vector<4x648xbf16>,
    %c0_65 = arith.constant 0 : index
    %c38_66 = arith.constant 38 : index
    %50 = vector.load %arg11[%c0_65, %c38_66] : memref<4x686xbf16, #tpu.memory_space<vmem>>, vector<4x648xbf16>
    %c68 = arith.constant 68 : index
    %c0_67 = arith.constant 0 : index
    %51 = vector.load %arg13[%c68, %c0_67] : memref<72x648xbf16, #tpu.memory_space<vmem>>, vector<4x648xbf16>
    tpu.vector_store %arg13[%c68, %c0_67], %50 {strides = array<i32>} : memref<72x648xbf16, #tpu.memory_space<vmem>>, vector<4x648xbf16>,
    %c0_68 = arith.constant 0 : index
    %c0_69 = arith.constant 0 : index
    %52 = vector.load %arg3[%c0_68, %c0_69] : memref<4x72xbf16, #tpu.memory_space<vmem>>, vector<4x72xbf16>
    %c0_70 = arith.constant 0 : index
    %c0_71 = arith.constant 0 : index
    %53 = vector.load %arg13[%c0_70, %c0_71] : memref<72x648xbf16, #tpu.memory_space<vmem>>, vector<72x648xbf16>
    %cst_72 = arith.constant dense<0.000000e+00> : vector<4x648xf32>
    %54 = tpu.matmul %52, %53, %cst_72 {dimension_numbers = #tpu.dot_dimension_numbers<[1], [0], [0], [1], [0, 0, 1, 1], [], []>} : vector<4x72xbf16>, vector<72x648xbf16>, vector<4x648xf32> -> vector<4x648xf32>
    %c0_73 = arith.constant 0 : index
    %c0_74 = arith.constant 0 : index
    %55 = vector.load %arg4[%c0_73, %c0_74] : memref<4x1xf32, #tpu.memory_space<vmem>>, vector<4x1xf32>
    %56 = vector.broadcast %55 : vector<4x1xf32> to vector<4x648xf32>
    %57 = arith.mulf %54, %56 : vector<4x648xf32>
    %c0_75 = arith.constant 0 : index
    %c0_76 = arith.constant 0 : index
    %58 = vector.load %arg5[%c0_75, %c0_76] : memref<4x1xf32, #tpu.memory_space<vmem>>, vector<4x1xf32>
    %59 = vector.broadcast %58 : vector<4x1xf32> to vector<4x648xf32>
    %60 = arith.addf %57, %59 : vector<4x648xf32>
    %cst_77 = arith.constant 0.000000e+00 : f32
    %61 = vector.broadcast %cst_77 : f32 to vector<4x648xf32>
    %62 = arith.maximumf %60, %61 : vector<4x648xf32>
    %c0_78 = arith.constant 0 : index
    %c0_79 = arith.constant 0 : index
    %63 = vector.load %arg9[%c0_78, %c0_79] : memref<1x648xf32, #tpu.memory_space<vmem>>, vector<1x648xf32>
    %64 = vector.broadcast %63 : vector<1x648xf32> to vector<4x648xf32>
    %65 = arith.mulf %62, %64 : vector<4x648xf32>
    %66 = arith.truncf %65 : vector<4x648xf32> to vector<4x648xbf16>
    %c0_80 = arith.constant 0 : index
    %c19_81 = arith.constant 19 : index
    %67 = vector.load %arg12[%c0_80, %c19_81] : memref<4x686xbf16, #tpu.memory_space<vmem>>, vector<4x648xbf16>
    tpu.vector_store %arg12[%c0_80, %c19_81], %66 {strides = array<i32>} : memref<4x686xbf16, #tpu.memory_space<vmem>>, vector<4x648xbf16>,
    %c0_82 = arith.constant 0 : index
    %c0_83 = arith.constant 0 : index
    %68 = vector.load %arg12[%c0_82, %c0_83] : memref<4x686xbf16, #tpu.memory_space<vmem>>, vector<4x648xbf16>
    %c0_84 = arith.constant 0 : index
    %c0_85 = arith.constant 0 : index
    %69 = vector.load %arg14[%c0_84, %c0_85] : memref<36x648xbf16, #tpu.memory_space<vmem>>, vector<4x648xbf16>
    tpu.vector_store %arg14[%c0_84, %c0_85], %68 {strides = array<i32>} : memref<36x648xbf16, #tpu.memory_space<vmem>>, vector<4x648xbf16>,
    %c0_86 = arith.constant 0 : index
    %c1_87 = arith.constant 1 : index
    %70 = vector.load %arg12[%c0_86, %c1_87] : memref<4x686xbf16, #tpu.memory_space<vmem>>, vector<4x648xbf16>
    %c4_88 = arith.constant 4 : index
    %c0_89 = arith.constant 0 : index
    %71 = vector.load %arg14[%c4_88, %c0_89] : memref<36x648xbf16, #tpu.memory_space<vmem>>, vector<4x648xbf16>
    tpu.vector_store %arg14[%c4_88, %c0_89], %70 {strides = array<i32>} : memref<36x648xbf16, #tpu.memory_space<vmem>>, vector<4x648xbf16>,
    %c0_90 = arith.constant 0 : index
    %c2_91 = arith.constant 2 : index
    %72 = vector.load %arg12[%c0_90, %c2_91] : memref<4x686xbf16, #tpu.memory_space<vmem>>, vector<4x648xbf16>
    %c8_92 = arith.constant 8 : index
    %c0_93 = arith.constant 0 : index
    %73 = vector.load %arg14[%c8_92, %c0_93] : memref<36x648xbf16, #tpu.memory_space<vmem>>, vector<4x648xbf16>
    tpu.vector_store %arg14[%c8_92, %c0_93], %72 {strides = array<i32>} : memref<36x648xbf16, #tpu.memory_space<vmem>>, vector<4x648xbf16>,
    %c0_94 = arith.constant 0 : index
    %c18_95 = arith.constant 18 : index
    %74 = vector.load %arg12[%c0_94, %c18_95] : memref<4x686xbf16, #tpu.memory_space<vmem>>, vector<4x648xbf16>
    %c12_96 = arith.constant 12 : index
    %c0_97 = arith.constant 0 : index
    %75 = vector.load %arg14[%c12_96, %c0_97] : memref<36x648xbf16, #tpu.memory_space<vmem>>, vector<4x648xbf16>
    tpu.vector_store %arg14[%c12_96, %c0_97], %74 {strides = array<i32>} : memref<36x648xbf16, #tpu.memory_space<vmem>>, vector<4x648xbf16>,
    %c0_98 = arith.constant 0 : index
    %c19_99 = arith.constant 19 : index
    %76 = vector.load %arg12[%c0_98, %c19_99] : memref<4x686xbf16, #tpu.memory_space<vmem>>, vector<4x648xbf16>
    %c16_100 = arith.constant 16 : index
    %c0_101 = arith.constant 0 : index
    %77 = vector.load %arg14[%c16_100, %c0_101] : memref<36x648xbf16, #tpu.memory_space<vmem>>, vector<4x648xbf16>
    tpu.vector_store %arg14[%c16_100, %c0_101], %76 {strides = array<i32>} : memref<36x648xbf16, #tpu.memory_space<vmem>>, vector<4x648xbf16>,
    %c0_102 = arith.constant 0 : index
    %c20_103 = arith.constant 20 : index
    %78 = vector.load %arg12[%c0_102, %c20_103] : memref<4x686xbf16, #tpu.memory_space<vmem>>, vector<4x648xbf16>
    %c20_104 = arith.constant 20 : index
    %c0_105 = arith.constant 0 : index
    %79 = vector.load %arg14[%c20_104, %c0_105] : memref<36x648xbf16, #tpu.memory_space<vmem>>, vector<4x648xbf16>
    tpu.vector_store %arg14[%c20_104, %c0_105], %78 {strides = array<i32>} : memref<36x648xbf16, #tpu.memory_space<vmem>>, vector<4x648xbf16>,
    %c0_106 = arith.constant 0 : index
    %c36_107 = arith.constant 36 : index
    %80 = vector.load %arg12[%c0_106, %c36_107] : memref<4x686xbf16, #tpu.memory_space<vmem>>, vector<4x648xbf16>
    %c24_108 = arith.constant 24 : index
    %c0_109 = arith.constant 0 : index
    %81 = vector.load %arg14[%c24_108, %c0_109] : memref<36x648xbf16, #tpu.memory_space<vmem>>, vector<4x648xbf16>
    tpu.vector_store %arg14[%c24_108, %c0_109], %80 {strides = array<i32>} : memref<36x648xbf16, #tpu.memory_space<vmem>>, vector<4x648xbf16>,
    %c0_110 = arith.constant 0 : index
    %c37_111 = arith.constant 37 : index
    %82 = vector.load %arg12[%c0_110, %c37_111] : memref<4x686xbf16, #tpu.memory_space<vmem>>, vector<4x648xbf16>
    %c28_112 = arith.constant 28 : index
    %c0_113 = arith.constant 0 : index
    %83 = vector.load %arg14[%c28_112, %c0_113] : memref<36x648xbf16, #tpu.memory_space<vmem>>, vector<4x648xbf16>
    tpu.vector_store %arg14[%c28_112, %c0_113], %82 {strides = array<i32>} : memref<36x648xbf16, #tpu.memory_space<vmem>>, vector<4x648xbf16>,
    %c0_114 = arith.constant 0 : index
    %c38_115 = arith.constant 38 : index
    %84 = vector.load %arg12[%c0_114, %c38_115] : memref<4x686xbf16, #tpu.memory_space<vmem>>, vector<4x648xbf16>
    %c32_116 = arith.constant 32 : index
    %c0_117 = arith.constant 0 : index
    %85 = vector.load %arg14[%c32_116, %c0_117] : memref<36x648xbf16, #tpu.memory_space<vmem>>, vector<4x648xbf16>
    tpu.vector_store %arg14[%c32_116, %c0_117], %84 {strides = array<i32>} : memref<36x648xbf16, #tpu.memory_space<vmem>>, vector<4x648xbf16>,
    %c0_118 = arith.constant 0 : index
    %c0_119 = arith.constant 0 : index
    %86 = vector.load %arg6[%c0_118, %c0_119] : memref<4x36xbf16, #tpu.memory_space<vmem>>, vector<4x36xbf16>
    %c0_120 = arith.constant 0 : index
    %c0_121 = arith.constant 0 : index
    %87 = vector.load %arg14[%c0_120, %c0_121] : memref<36x648xbf16, #tpu.memory_space<vmem>>, vector<36x648xbf16>
    %cst_122 = arith.constant dense<0.000000e+00> : vector<4x648xf32>
    %88 = tpu.matmul %86, %87, %cst_122 {dimension_numbers = #tpu.dot_dimension_numbers<[1], [0], [0], [1], [0, 0, 1, 1], [], []>} : vector<4x36xbf16>, vector<36x648xbf16>, vector<4x648xf32> -> vector<4x648xf32>
    %c0_123 = arith.constant 0 : index
    %c0_124 = arith.constant 0 : index
    %89 = vector.load %arg7[%c0_123, %c0_124] : memref<4x1xf32, #tpu.memory_space<vmem>>, vector<4x1xf32>
    %90 = vector.broadcast %89 : vector<4x1xf32> to vector<4x648xf32>
    %91 = arith.mulf %88, %90 : vector<4x648xf32>
    %c0_125 = arith.constant 0 : index
    %c0_126 = arith.constant 0 : index
    %92 = vector.load %arg8[%c0_125, %c0_126] : memref<4x1xf32, #tpu.memory_space<vmem>>, vector<4x1xf32>
    %93 = vector.broadcast %92 : vector<4x1xf32> to vector<4x648xf32>
    %94 = arith.addf %91, %93 : vector<4x648xf32>
    %cst_127 = arith.constant 0.000000e+00 : f32
    %95 = vector.broadcast %cst_127 : f32 to vector<4x648xf32>
    %96 = arith.maximumf %94, %95 : vector<4x648xf32>
    %c0_128 = arith.constant 0 : index
    %c0_129 = arith.constant 0 : index
    %97 = vector.load %arg10[%c0_128, %c0_129] : memref<4x648xf32, #tpu.memory_space<vmem>>, vector<4x648xf32>
    tpu.vector_store %arg10[%c0_128, %c0_129], %96 {strides = array<i32>} : memref<4x648xf32, #tpu.memory_space<vmem>>, vector<4x648xf32>,
    return
  }
}

</mosaic_0001>

<bundles_post_ra>
// kernel: tpu_custom_call.1
= control target key start
LH: loop header
LB: loop body
LE: loop exit
PB: predicated region body
PF: predicated region fallthrough
CT: control target
= control target key end

     0   :  { %15 = vsyncpa [#allocation7], 0  ;;  %s3394_s0 = inlined_call_operand.hbm [shape: bf16[2,4,64], index: 0, kind: input, shape index: {}]   ;;  %s3395_s1 = inlined_call_operand.vmem [shape: bf16[4,686], index: 1, kind: input, shape index: {}]   ;;  %s3396_s2 = inlined_call_operand.hbm [shape: bf16[64,324], index: 2, kind: input, shape index: {}]   ;;  %s3397_s3 = inlined_call_operand.vmem [shape: bf16[4,72], index: 3, kind: input, shape index: {}]   ;;  %s3398_s4 = inlined_call_operand.vmem [shape: f32[4,1], index: 4, kind: input, shape index: {}]   ;;  %s3399_s5 = inlined_call_operand.vmem [shape: f32[4,1], index: 5, kind: input, shape index: {}]   ;;  %s3400_s6 = inlined_call_operand.vmem [shape: bf16[4,36], index: 6, kind: input, shape index: {}]   ;;  %s3401_s7 = inlined_call_operand.vmem [shape: f32[4,1], index: 7, kind: input, shape index: {}]   ;;  %s3402_s8 = inlined_call_operand.vmem [shape: f32[4,1], index: 8, kind: input, shape index: {}]   ;;  %s3403_s9 = inlined_call_operand.vmem [shape: f32[1,648], index: 9, kind: input, shape index: {}]   ;;  %s3404_s10 = inlined_call_operand.hbm [shape: f32[4,648], index: 10, kind: output, shape index: {}]  }
   0x1   :  { %16 = vsyncpa [#allocation10], 0 }
   0x2   :  { %17 = vsyncpa [#allocation8], 0  ;;  %s2768_s13 = smov [#allocation6]  }
   0x3   :  { %s23_s14 = sshll.u32 %s2768_s13, 4  ;;  %s24_s14 = int_to_ptr.vmem [resolvable:$true] %s23_s14 }
   0x4   :  { %s2710_s15 = scalar_lea.vmem %s24_s14, 64  ;;  %p2715_p1 = scmp.lt.s32.totalorder %s24_s14, %s24_s14 }
   0x5   :  { %p2711_p0 = scmp.ne.s32.totalorder %s24_s14, %s2710_s15  ;;  %p2716_p2 = scmp.lt.s32.totalorder %s2710_s15, %s2710_s15 }
   0x7   :  { %p2717_p3 = por %p2716_p2, %p2715_p1 }
   0x9   :  { %p2718_p4 = pnand %p2717_p3, %p2711_p0 }
   0xb   :  { %2721 = shalt.err (!%p2718_p4)
}
   0xc   :  { %s2769_s16 = smov 32   ;;  %s2770_s17 = smov 2  }
   0xd   :  { %29 = dma.hbm_to_vmem [thread:$0]  %s3394_s0, 64, %s24_s14, [#allocation7], %s2769_s16, %s2769_s16, %s2770_s17  }
   0xe   :  { %s2771_s20 = smov [#allocation9]  }
   0xf   :  { %s37_s21 = sshll.u32 %s2771_s20, 4  ;;  %s38_s21 = int_to_ptr.vmem [resolvable:$true] %s37_s21 }
  0x10   :  { %s2730_s22 = scalar_lea.vmem %s38_s21, 1536  ;;  %p2735_p6 = scmp.lt.s32.totalorder %s38_s21, %s38_s21 }
  0x11   :  { %p2731_p5 = scmp.ne.s32.totalorder %s38_s21, %s2730_s22  ;;  %p2736_p7 = scmp.lt.s32.totalorder %s2730_s22, %s2730_s22 }
  0x13   :  { %p2737_p8 = por %p2736_p7, %p2735_p6 }
  0x15   :  { %p2738_p9 = pnand %p2737_p8, %p2731_p5 }
  0x17   :  { %2741 = shalt.err (!%p2738_p9)
}
  0x18   :  { %s2772_s23 = smov 192   ;;  %s2773_s24 = smov 12  }
  0x19   :  { %43 = dma.hbm_to_vmem [thread:$0]  %s3396_s2, 1536, %s38_s21, [#allocation10], %s2772_s23, %s2772_s23, %s2773_s24  }
  0x1a   :  { %2762 = dma.done.wait [#allocation7], 64  }
  0x1b   :  { %2763 = vsyncadd [#allocation7], 4294967232 }
  0x1c   :  { %2764 = dma.done.wait [#allocation10], 1536  }
  0x1d   :  { %2765 = vsyncadd [#allocation10], 4294965760  ;;  %v2774_v0 = vmov 0.0   ;;  %vm2775_vm0 = vmmov 0   ;;  %v2776_v1 = vmov 0   ;;  %vm153_vm1 = vcmask 523264  }
  0x1e   :  { %2554 = vmatprep.subr.bf16.mxu1 %v2774_v0  ;;  %2562 = vmatprep.mubr.msk.bf16.mxu1 %vm2775_vm0, %v2774_v0  ;;  %65 = vst [vmem:[#allocation2] sm:$0xff] %v2776_v1  ;;  %70 = vst [vmem:[#allocation3] sm:$0xff] %v2776_v1  ;;  %v2601_v2 = vld [vmem:[#allocation9 + $0x4c] ss:$12 sps:$4 sm:$0xff]   ;;  %v2603_v3 = vld [vmem:[#allocation9 + $0x50] ss:$12 sps:$4 sm:$0xff]   ;;  %v248_v22 = vlaneseq }
  0x1f   :  { %189 = vmatprep.mubr.bf16.mxu0 %v2776_v1  ;;  %2599 = vset.pattern.permute.xlu0 %v2776_v1  ;;  %v2604_v4 = vld [vmem:[#allocation9 + $0x48] ss:$12 sps:$4 sm:$0xff]   ;;  %v2607_v6 = vld [vmem:[#allocation9 + $0x38] ss:$12 sps:$4 sm:$0xff]   ;;  %v2608_v7 = vld [vmem:[#allocation9 + $0x30] ss:$12 sps:$4 sm:$0xff]  }
  0x20   :  { %2600 = vset.pattern.permute.xlu1 %v2776_v1  ;;  %165 = vmatprep.subr.bf16.mxu0 %v2601_v2  ;;  %v2605_v5 = vld [vmem:[#allocation9 + $0x34] ss:$12 sps:$4 sm:$0xff]   ;;  %v2609_v8 = vld [vmem:[#allocation9 + $0x1c] ss:$12 sps:$4 sm:$0xff]   ;;  %v2612_v10 = vld [vmem:[#allocation9 + $0x18] ss:$12 sps:$4 sm:$0xff]  }
  0x21   :  { %2555 = vmatpush3.bf16.msra.mxu1 %v2603_v3  ;;  %166 = vmatpush1.bf16.msra.mxu0 %v2604_v4  ;;  %v2611_v9 = vld [vmem:[#allocation9 + $0x20] ss:$12 sps:$4 sm:$0xff]   ;;  %v2613_v11 = vld [vmem:[#allocation9 + $0x4] ss:$12 sps:$4 sm:$0xff]   ;;  %v2615_v12 = vld [vmem:[#allocation9 + $0x8] ss:$12 sps:$4 sm:$0xff]  }
  0x22   :  { %2556 = vmatprep.subr.bf16.mxu1 %v2774_v0  ;;  %167 = vmatprep.subr.bf16.mxu0 %v2605_v5  ;;  %v2616_v13 = vld [vmem:[#allocation9] ss:$12 sps:$4 sm:$0xff]   ;;  %v72_v14 = vld [vmem:[#allocation6] sm:$0x3]  ;;  %v2618_v16 = vld [vmem:[#allocation9 + $0x38] ss:$12 sps:$4 sm:$0xff]  }
  0x23   :  { %v2617_v15 = vld [vmem:[#allocation9 + $0x50] ss:$12 sps:$4 sm:$0xff]   ;;  %v2619_v17 = vld [vmem:[#allocation9 + $0x20] ss:$12 sps:$4 sm:$0xff]   ;;  %v2620_v18 = vld [vmem:[#allocation9 + $0x8] ss:$12 sps:$4 sm:$0xff]  }
  0x24   :  { %v273_v19 = vld [vmem:[#allocation6 + $0x2] sm:$0x3]  ;;  %v2777_v20 = vmov 1983009808   ;;  %v2864_v24 = vshrl.u32 %v248_v22, 7  ;;  %v1013_v26 = vld [vmem:[%s3395_s1] sm:$0xff] }
  0x25   :  { %2557 = vmatpush3.bf16.msra.mxu1 %v2607_v6  ;;  %168 = vmatpush1.bf16.msra.mxu0 %v2608_v7  ;;  %v246_v21 = vunpack.c.l.s4 %v2777_v20  ;;  %2462 = vst.sshfl [vmem:[#allocation4] sm:$0xf pattern:$0x76325410] %v1013_v26  ;;  %s2778_s27 = smov 90   ;;  %v1205_v28 = vcombine.high %v1013_v26, %v1013_v26  ;;  %s2779_s28 = smov 92  }
  0x26   :  { %2558 = vmatprep.subr.bf16.mxu1 %v2774_v0  ;;  %169 = vmatprep.subr.bf16.mxu0 %v2609_v8  ;;  %s2780_s29 = smov 91   ;;  %s2781_s30 = smov 109   ;;  %vm66_vm2 = vcmask 1041408   ;;  %vm67_vm3 = vcmask 371714   ;;  %vm504_vm5 = vcmask 62468   ;;  %vm577_vm7 = vcmask 1043456  }
  0x27   :  { %v247_v23 = vunpack.c.0.s8 %v246_v21  ;;  %2463 = vst.sshfl [vmem:[#allocation4 + $0x8] sm:$0xf pattern:$0x76325410] %v1205_v28  ;;  %s2782_s11 = smov 108   ;;  %s2783_s12 = smov 126   ;;  %vm68_vm4 = vmor %vm67_vm3, %vm66_vm2 }
  0x28   :  { %69 = vst.msk [vmem:[#allocation2 + $0x8] sm:$0xf] %vm68_vm4, %v2776_v1  ;;  %71 = vst.msk [vmem:[#allocation3 + $0x8] sm:$0xf] %vm68_vm4, %v2776_v1  ;;  %s2784_s13 = smov 110   ;;  %s2785_s14 = smov 19  }
  0x29   :  { %2559 = vmatpush3.bf16.msra.mxu1 %v2611_v9  ;;  %170 = vmatpush1.bf16.msra.mxu0 %v2612_v10  ;;  %v2867_v25 = vsub.s32 %v247_v23, %v2864_v24  ;;  %s2786_s15 = smov 127   ;;  %s2787_s16 = smov 87   ;;  %v2897_v56 = vld.sshfl [vmem:[%s3395_s1 + $0x8] sm:$0x33 pattern:$0x76325410]  ;;  %vm2902_vm6 = vmor %vm504_vm5, %vm66_vm2 }
  0x2a   :  { %2560 = vmatprep.subr.bf16.mxu1 %v2774_v0  ;;  %171 = vmatprep.subr.bf16.mxu0 %v2613_v11  ;;  %506 = vst.msk [vmem:[#allocation4 + $0x10] sm:$0x33] %vm2902_vm6, %v2897_v56  ;;  %vm1237_vm8 = vcmask 736256   ;;  %vm266_vm9 = vcmask 1041560   ;;  %vm267_vm10 = vcmask 1043458   ;;  %vm269_vm12 = vcmask 709636  }
  0x2b   :  { %v2873_v27 = vrot.slane %v1013_v26, %v2867_v25  ;;  %v1219_v29 = vrot.slane %v1205_v28, %v2867_v25  ;;  %vm2938_vm11 = vmor %vm267_vm10, %vm266_vm9  ;;  %vm263_vm13 = vcmask 154624   ;;  %vm466_vm15 = vcmask 1042104  }
  0x2c   :  { %vm270_vm14 = vmor %vm269_vm12, %vm2938_vm11  ;;  %vm470_vm4 = vcmask 220166   ;;  %vm463_vm5 = vcmask 711680   ;;  %vm539_vm12 = vcmask 64518  }
  0x2d   :  { %2561 = vmatpush3.bf16.msra.mxu1 %v2615_v12  ;;  %172 = vmatpush1.bf16.msra.mxu0 %v2616_v13 }
  0x2e   :  { %2566 = vmatprep.subr.bf16.mxu1 %v2774_v0  ;;  %365 = vmatprep.subr.bf16.mxu0 %v2601_v2 }
  0x2f   :  { %1227 = vrot.lane.b32.xlu1 %v2873_v27, %s2778_s27 }
  0x30   :  { %2563 = vmatmul.mubr.msk.bf16.vlgmr.msra.gmra.mxu1 %vm153_vm1, %v72_v14  ;;  %2443 = vmatmul.mubr.msk.bf16.vlgmr.msra.gmra.mxu0 %vm153_vm1, %v72_v14 }
  0x31   :  { %2567 = vmatpush3.bf16.msra.mxu1 %v2617_v15  ;;  %366 = vmatpush1.bf16.msra.mxu0 %v2604_v4 }
  0x32   :  { %2568 = vmatprep.subr.bf16.mxu1 %v2774_v0  ;;  %367 = vmatprep.subr.bf16.mxu0 %v2605_v5 }
  0x33   :  { %2574 = vmatprep.mubr.msk.bf16.mxu1 %vm2775_vm0, %v2774_v0  ;;  %389 = vmatprep.mubr.bf16.mxu0 %v2776_v1  ;;  %vm467_vm0 = vmor %vm267_vm10, %vm466_vm15 }
  0x34   :  { %1229 = vrot.lane.b32.xlu1 %v1219_v29, %s2778_s27  ;;  %vm2954_vm15 = vmor %vm539_vm12, %vm267_vm10  ;;  %vm1143_vm10 = vcmask 744448   ;;  %vm1458_vm12 = vcmask 588800  }
  0x35   :  { %2569 = vmatpush3.bf16.msra.mxu1 %v2618_v16  ;;  %368 = vmatpush1.bf16.msra.mxu0 %v2608_v7 }
  0x36   :  { %2570 = vmatprep.subr.bf16.mxu1 %v2774_v0  ;;  %369 = vmatprep.subr.bf16.mxu0 %v2609_v8 }
  0x38   :  { %1041 = vrot.lane.b32.xlu1 %v1219_v29, %s2779_s28 }
  0x39   :  { %2571 = vmatpush3.bf16.msra.mxu1 %v2619_v17  ;;  %370 = vmatpush1.bf16.msra.mxu0 %v2612_v10 }
  0x3a   :  { %2572 = vmatprep.subr.bf16.mxu1 %v2774_v0  ;;  %371 = vmatprep.subr.bf16.mxu0 %v2613_v11 }
  0x3c   :  { %1135 = vrot.lane.b32.xlu1 %v1219_v29, %s2780_s29 }
  0x3d   :  { %2573 = vmatpush3.bf16.msra.mxu1 %v2620_v18  ;;  %372 = vmatpush1.bf16.msra.mxu0 %v2616_v13 }
  0x40   :  { %2575 = vmatmul.mubr.msk.bf16.vlgmr.msra.gmra.mxu1 %vm153_vm1, %v273_v19  ;;  %2458 = vmatmul.mubr.msk.bf16.vlgmr.msra.gmra.mxu0 %vm153_vm1, %v273_v19  ;;  %vm468_vm1 = vcmask 1045508  }
  0x41   :  { %1554 = vmatprep.mubr.bf16.mxu1 %v2776_v1  ;;  %1513 = vmatprep.mubr.bf16.mxu0 %v2776_v1  ;;  %vm469_vm3 = vmor %vm468_vm1, %vm467_vm0  ;;  %vm861_vm0 = vcmask 891904  }
  0x42   :  { %853 = vrot.lane.b32.xlu1 %v1219_v29, %s2781_s30  ;;  %vm471_vm9 = vmor %vm470_vm4, %vm469_vm3  ;;  %vm955_vm3 = vcmask 883712   ;;  %vm3405_vm4 = vcmask 1031168  }
  0x46   :  { %947 = vrot.lane.b32.xlu1 %v1219_v29, %s2782_s11 }
  0x4a   :  { %665 = vrot.lane.b32.xlu1 %v1219_v29, %s2783_s12 }
  0x4e   :  { %759 = vrot.lane.b32.xlu1 %v1219_v29, %s2784_s13 }
  0x52   :  { %570 = vrot.lane.b32.xlu1 %v1219_v29, %s2786_s15 }
  0xa1   :  { %v1228_v58 = vpop.permute.xlu1 %1227 }
  0xa2   :  { %v1233_v59 = vrot.slane %v1228_v58, 4 }
  0xa6   :  { %v1230_v60 = vpop.permute.xlu1 %1229 }
  0xa7   :  { %v1234_v61 = vrot.slane %v1230_v60, 4 }
  0xa9   :  { %v1236_v62 = vsel %vm577_vm7, %v1233_v59, %v1234_v61 }
  0xaa   :  { %v1238_v63 = vsel %vm1237_vm8, %v1228_v58, %v1236_v62  ;;  %v1042_v10 = vpop.permute.xlu1 %1041 }
  0xab   :  { %1245 = vst [vmem:[#allocation4 + $0xc0] sm:$0x33] %v1238_v63  ;;  %v1046_v16 = vrot.slane %v1042_v10, 4 }
  0xae   :  { %v1136_v29 = vpop.permute.xlu1 %1135 }
  0xf0   :  { %v232_v30 = vpop.f32.mrf.mxu1  ;;  %v191_v32 = vpop.f32.mrf.mxu0 }
  0xf1   :  { %v240_v31 = vpack.c.bf16 %v232_v30, %v232_v30 }
  0xf2   :  { %v2564_v33 = vpop.f32.mrf.mxu1  ;;  %v193_v34 = vpop.f32.mrf.mxu0 }
  0xf3   :  { %v258_v35 = vrot.slane %v240_v31, %v2867_v25  ;;  %v2445_v36 = vpack.c.bf16 %v193_v34, %v191_v32  ;;  %v1140_v33 = vrot.slane %v1136_v29, 4 }
  0xf4   :  { %v235_v37 = vpop.f32.mrf.mxu1  ;;  %v195_v38 = vpop.f32.mrf.mxu0 }
  0xf5   :  { %v251_v39 = vrot.slane %v2445_v36, %v2867_v25 }
  0xf6   :  { %v2565_v40 = vpop.f32.mrf.mxu1  ;;  %v196_v41 = vpop.f32.mrf.mxu0 }
  0xf7   :  { %v259_v42 = vcombine.low %v251_v39, %v258_v35  ;;  %v854_v40 = vpop.permute.xlu1 %853 }
  0xf9   :  { %260 = vrot.lane.b32.xlu0 %v259_v42, %s2785_s14 }
 0x100   :  { %v432_v43 = vpop.f32.mrf.mxu1  ;;  %v391_v45 = vpop.f32.mrf.mxu0 }
 0x101   :  { %v440_v44 = vpack.c.bf16 %v432_v43, %v432_v43 }
 0x102   :  { %v2576_v46 = vpop.f32.mrf.mxu1  ;;  %v393_v47 = vpop.f32.mrf.mxu0 }
 0x103   :  { %v458_v48 = vrot.slane %v440_v44, %v2867_v25  ;;  %v2460_v49 = vpack.c.bf16 %v393_v47, %v391_v45  ;;  %v858_v47 = vrot.slane %v854_v40, 4 }
 0x104   :  { %v435_v50 = vpop.f32.mrf.mxu1  ;;  %v395_v51 = vpop.f32.mrf.mxu0 }
 0x105   :  { %v451_v52 = vrot.slane %v2460_v49, %v2867_v25 }
 0x106   :  { %v2577_v53 = vpop.f32.mrf.mxu1  ;;  %v396_v54 = vpop.f32.mrf.mxu0 }
 0x107   :  { %v459_v55 = vcombine.low %v451_v52, %v458_v48  ;;  %v948_v48 = vpop.permute.xlu1 %947 }
 0x108   :  { %v952_v53 = vrot.slane %v948_v48, 4 }
 0x109   :  { %460 = vrot.lane.b32.xlu0 %v459_v55, %s2787_s16 }
 0x10d   :  { %1231 = vrot.lane.b32.xlu0 %v2897_v56, %s2778_s27 }
 0x111   :  { %1039 = vrot.lane.b32.xlu0 %v2873_v27, %s2779_s28 }
 0x115   :  { %1133 = vrot.lane.b32.xlu0 %v2873_v27, %s2780_s29 }
 0x119   :  { %1043 = vrot.lane.b32.xlu0 %v2897_v56, %s2779_s28 }
 0x11d   :  { %1137 = vrot.lane.b32.xlu0 %v2897_v56, %s2780_s29 }
 0x121   :  { %851 = vrot.lane.b32.xlu0 %v2873_v27, %s2781_s30 }
 0x125   :  { %945 = vrot.lane.b32.xlu0 %v2873_v27, %s2782_s11 }
 0x129   :  { %855 = vrot.lane.b32.xlu0 %v2897_v56, %s2781_s30 }
 0x12d   :  { %949 = vrot.lane.b32.xlu0 %v2897_v56, %s2782_s11 }
 0x131   :  { %663 = vrot.lane.b32.xlu0 %v2873_v27, %s2783_s12 }
 0x135   :  { %757 = vrot.lane.b32.xlu0 %v2873_v27, %s2784_s13 }
 0x139   :  { %667 = vrot.lane.b32.xlu0 %v2897_v56, %s2783_s12 }
 0x13d   :  { %761 = vrot.lane.b32.xlu0 %v2897_v56, %s2784_s13 }
 0x141   :  { %568 = vrot.lane.b32.xlu0 %v2873_v27, %s2786_s15 }
 0x16b   :  { %v261_v2 = vpop.permute.xlu0 %260 }
 0x16c   :  { %v262_v3 = vrot.slane %v261_v2, 6 }
 0x16e   :  { %v264_v4 = vsel %vm263_vm13, %v262_v3, %v261_v2  ;;  %v666_v2 = vpop.permute.xlu1 %665 }
 0x16f   :  { %271 = vst.msk [vmem:[#allocation2] sm:$0x3f] %vm270_vm14, %v264_v4  ;;  %vm3407_vm14 = vcmask 752640  }
 0x17b   :  { %v461_v5 = vpop.permute.xlu0 %460 }
 0x17c   :  { %v462_v6 = vrot.slane %v461_v5, 6 }
 0x17e   :  { %v464_v7 = vsel %vm463_vm5, %v462_v6, %v461_v5  ;;  %vm3406_vm5 = vcmask 900096  }
 0x17f   :  { %472 = vst.msk [vmem:[#allocation2 + $0x4] sm:$0xff] %vm471_vm9, %v464_v7  ;;  %v1232_v8 = vpop.permute.xlu0 %1231  ;;  %vm3408_vm9 = vcmask 1039360  }
 0x180   :  { %v1235_v9 = vrot.slane %v1232_v8, 4 }
 0x182   :  { %v1241_v11 = vsel %vm1237_vm8, %v1232_v8, %v1235_v9  ;;  %v1239_v12 = vsel %vm577_vm7, %v1234_v61, %v1235_v9 }
 0x183   :  { %1247 = vst.msk [vmem:[#allocation4 + $0xd0] sm:$0x33] %vm2902_vm6, %v1241_v11  ;;  %v1040_v13 = vpop.permute.xlu0 %1039  ;;  %v1240_v14 = vsel %vm1237_vm8, %v1230_v60, %v1239_v12  ;;  %v760_v11 = vpop.permute.xlu1 %759 }
 0x184   :  { %v1045_v15 = vrot.slane %v1040_v13, 4  ;;  %1246 = vst [vmem:[#allocation4 + $0xc8] sm:$0x33] %v1240_v14 }
 0x186   :  { %v2622_v17 = vld [vmem:[#allocation2 + $0x8] ss:$0 sps:$4 sm:$0xff]   ;;  %v1248_v18 = vld [vmem:[#allocation2] sm:$0xff]  ;;  %v1048_v19 = vsel %vm577_vm7, %v1045_v15, %v1046_v16 }
 0x187   :  { %v2959_v21 = vrot.slane %v1248_v18, %v2867_v25  ;;  %v1252_v22 = vcombine.low %v1248_v18, %v1248_v18  ;;  %v1134_v23 = vpop.permute.xlu0 %1133  ;;  %v1050_v26 = vsel %vm3407_vm14, %v1040_v13, %v1048_v19  ;;  %2465 = vst.sshfl [vmem:[#allocation4 + $0x8] sm:$0xf0 pattern:$0x76325410] %v1248_v18  ;;  %v533_v27 = vrot.slane %v2622_v17, %v2867_v25  ;;  %v2624_v6 = vld [vmem:[#allocation2 + $0x8] ss:$0 sps:$4 sm:$0xff]  }
 0x188   :  { %1057 = vst [vmem:[#allocation4 + $0x90] sm:$0x33] %v1050_v26  ;;  %v1139_v31 = vrot.slane %v1134_v23, 4  ;;  %v1274_v13 = vrot.slane %v2624_v6, %v2867_v25  ;;  %v2625_v14 = vld [vmem:[#allocation2 + $0x8] ss:$0 sps:$4 sm:$0xff]   ;;  %v764_v18 = vrot.slane %v760_v11, 4 }
 0x189   :  { %1277 = vrot.lane.b32.xlu1 %v2959_v21, %s2778_s27  ;;  %v2966_v28 = vrot.slane %v1252_v22, %v2867_v25  ;;  %2464 = vst.sshfl [vmem:[#allocation4] sm:$0xf0 pattern:$0x76325410] %v1252_v22  ;;  %541 = vst.msk [vmem:[#allocation4 + $0x10] sm:$0xcc] %vm2954_vm15, %v533_v27 }
 0x18a   :  { %v1142_v36 = vsel %vm577_vm7, %v1139_v31, %v1140_v33  ;;  %v2626_v22 = vld [vmem:[#allocation2 + $0x8] ss:$0 sps:$4 sm:$0xff]  }
 0x18b   :  { %1275 = vrot.lane.b32.xlu0 %v2966_v28, %s2778_s27  ;;  %v1044_v30 = vpop.permute.xlu0 %1043  ;;  %v1144_v39 = vsel %vm1143_vm10, %v1134_v23, %v1142_v36  ;;  %v2627_v31 = vld [vmem:[#allocation2 + $0x8] ss:$0 sps:$4 sm:$0xff]  }
 0x18c   :  { %v1047_v32 = vrot.slane %v1044_v30, 4  ;;  %1151 = vst [vmem:[#allocation4 + $0xa8] sm:$0x33] %v1144_v39  ;;  %v2628_v39 = vld [vmem:[#allocation2 + $0x8] ss:$0 sps:$4 sm:$0xff]  }
 0x18d   :  { %1089 = vrot.lane.b32.xlu1 %v2959_v21, %s2779_s28 }
 0x18e   :  { %v1053_v34 = vsel %vm3407_vm14, %v1044_v30, %v1047_v32  ;;  %v1051_v35 = vsel %vm577_vm7, %v1046_v16, %v1047_v32  ;;  %v1180_v30 = vrot.slane %v2626_v22, %v2867_v25 }
 0x18f   :  { %1087 = vrot.lane.b32.xlu0 %v2966_v28, %s2779_s28  ;;  %1059 = vst.msk [vmem:[#allocation4 + $0xa0] sm:$0x33] %vm2902_vm6, %v1053_v34  ;;  %v1138_v37 = vpop.permute.xlu0 %1137  ;;  %v1052_v38 = vsel %vm3407_vm14, %v1042_v10, %v1051_v35  ;;  %v670_v10 = vrot.slane %v666_v2, 4 }
 0x190   :  { %v1141_v41 = vrot.slane %v1138_v37, 4  ;;  %1058 = vst [vmem:[#allocation4 + $0x98] sm:$0x33] %v1052_v38  ;;  %v898_v38 = vrot.slane %v2627_v31, %v2867_v25 }
 0x191   :  { %1183 = vrot.lane.b32.xlu1 %v2959_v21, %s2780_s29 }
 0x192   :  { %v1147_v42 = vsel %vm1143_vm10, %v1138_v37, %v1141_v41  ;;  %v1145_v43 = vsel %vm577_vm7, %v1140_v33, %v1141_v41  ;;  %v3042_v33 = vpop.permute.xlu1 %570 }
 0x193   :  { %1181 = vrot.lane.b32.xlu0 %v2966_v28, %s2780_s29  ;;  %1153 = vst.msk [vmem:[#allocation4 + $0xb8] sm:$0x33] %vm2902_vm6, %v1147_v42  ;;  %v852_v44 = vpop.permute.xlu0 %851  ;;  %v1146_v45 = vsel %vm1143_vm10, %v1136_v29, %v1145_v43  ;;  %v575_v37 = vrot.slane %v3042_v33, 4 }
 0x194   :  { %v857_v46 = vrot.slane %v852_v44, 4  ;;  %1152 = vst [vmem:[#allocation4 + $0xb0] sm:$0x33] %v1146_v45  ;;  %v2629_v45 = vld [vmem:[#allocation2 + $0x8] ss:$0 sps:$4 sm:$0xff]  }
 0x195   :  { %901 = vrot.lane.b32.xlu1 %v2959_v21, %s2781_s30 }
 0x196   :  { %v860_v49 = vsel %vm577_vm7, %v857_v46, %v858_v47 }
 0x197   :  { %899 = vrot.lane.b32.xlu0 %v2966_v28, %s2781_s30  ;;  %v946_v50 = vpop.permute.xlu0 %945  ;;  %v862_v51 = vsel %vm861_vm0, %v852_v44, %v860_v49  ;;  %v992_v44 = vrot.slane %v2628_v39, %v2867_v25 }
 0x198   :  { %v951_v52 = vrot.slane %v946_v50, 4  ;;  %869 = vst [vmem:[#allocation4 + $0x60] sm:$0x33] %v862_v51 }
 0x199   :  { %995 = vrot.lane.b32.xlu1 %v2959_v21, %s2782_s11 }
 0x19a   :  { %v954_v54 = vsel %vm577_vm7, %v951_v52, %v952_v53  ;;  %v1604_v52 = vld [vmem:[%s3398_s4] sm:$0xf] }
 0x19b   :  { %993 = vrot.lane.b32.xlu0 %v2966_v28, %s2782_s11  ;;  %v856_v55 = vpop.permute.xlu0 %855  ;;  %v956_v58 = vsel %vm955_vm3, %v946_v50, %v954_v54  ;;  %v2631_v50 = vld [vmem:[#allocation2 + $0x8] ss:$0 sps:$4 sm:$0xff]  }
 0x19c   :  { %v859_v59 = vrot.slane %v856_v55, 4  ;;  %963 = vst [vmem:[#allocation4 + $0x78] sm:$0x33] %v956_v58  ;;  %v616_v51 = vrot.slane %v2631_v50, %v2867_v25 }
 0x19d   :  { %713 = vrot.lane.b32.xlu1 %v2959_v21, %s2783_s12 }
 0x19e   :  { %v865_v60 = vsel %vm861_vm0, %v856_v55, %v859_v59  ;;  %v863_v61 = vsel %vm577_vm7, %v858_v47, %v859_v59  ;;  %v710_v47 = vrot.slane %v2629_v45, %v2867_v25 }
 0x19f   :  { %711 = vrot.lane.b32.xlu0 %v2966_v28, %s2783_s12  ;;  %871 = vst.msk [vmem:[#allocation4 + $0x70] sm:$0x33] %vm2902_vm6, %v865_v60  ;;  %v950_v62 = vpop.permute.xlu0 %949  ;;  %v864_v63 = vsel %vm861_vm0, %v854_v40, %v863_v61 }
 0x1a0   :  { %v953_v3 = vrot.slane %v950_v62, 4  ;;  %870 = vst [vmem:[#allocation4 + $0x68] sm:$0x33] %v864_v63 }
 0x1a1   :  { %807 = vrot.lane.b32.xlu1 %v2959_v21, %s2784_s13 }
 0x1a2   :  { %v959_v4 = vsel %vm955_vm3, %v950_v62, %v953_v3  ;;  %v957_v5 = vsel %vm577_vm7, %v952_v53, %v953_v3  ;;  %v1616_v53 = vld [vmem:[%s3399_s5] sm:$0xf] }
 0x1a3   :  { %805 = vrot.lane.b32.xlu0 %v2966_v28, %s2784_s13  ;;  %965 = vst.msk [vmem:[#allocation4 + $0x88] sm:$0x33] %vm2902_vm6, %v959_v4  ;;  %v664_v7 = vpop.permute.xlu0 %663  ;;  %v958_v8 = vsel %vm955_vm3, %v948_v48, %v957_v5  ;;  %v2630_v48 = vld [vmem:[#allocation2 + $0x8] ss:$0 sps:$4 sm:$0xff]  }
 0x1a4   :  { %v669_v9 = vrot.slane %v664_v7, 4  ;;  %964 = vst [vmem:[#allocation4 + $0x80] sm:$0x33] %v958_v8  ;;  %v804_v49 = vrot.slane %v2630_v48, %v2867_v25 }
 0x1a5   :  { %619 = vrot.lane.b32.xlu1 %v2959_v21, %s2786_s15  ;;  %v1086_v21 = vrot.slane %v2625_v14, %v2867_v25 }
 0x1a6   :  { %v672_v12 = vsel %vm577_vm7, %v669_v9, %v670_v10 }
 0x1a7   :  { %617 = vrot.lane.b32.xlu0 %v2966_v28, %s2786_s15  ;;  %v758_v15 = vpop.permute.xlu0 %757  ;;  %v674_v16 = vsel %vm3405_vm4, %v664_v7, %v672_v12 }
 0x1a8   :  { %v763_v17 = vrot.slane %v758_v15, 4  ;;  %681 = vst [vmem:[#allocation4 + $0x30] sm:$0x33] %v674_v16 }
 0x1a9   :  { %1279 = vrot.lane.b32.xlu1 %v1274_v13, %s2778_s27 }
 0x1aa   :  { %v766_v19 = vsel %vm577_vm7, %v763_v17, %v764_v18 }
 0x1ab   :  { %572 = vrot.lane.b32.xlu0 %v2897_v56, %s2786_s15  ;;  %v668_v23 = vpop.permute.xlu0 %667  ;;  %v768_v26 = vsel %vm3406_vm5, %v758_v15, %v766_v19 }
 0x1ac   :  { %v671_v27 = vrot.slane %v668_v23, 4  ;;  %775 = vst [vmem:[#allocation4 + $0x48] sm:$0x33] %v768_v26 }
 0x1ad   :  { %1091 = vrot.lane.b32.xlu1 %v1086_v21, %s2779_s28 }
 0x1ae   :  { %v675_v28 = vsel %vm577_vm7, %v670_v10, %v671_v27  ;;  %v677_v29 = vsel %vm3405_vm4, %v668_v23, %v671_v27 }
 0x1af   :  { %v676_v32 = vsel %vm3405_vm4, %v666_v2, %v675_v28  ;;  %683 = vst.msk [vmem:[#allocation4 + $0x40] sm:$0x33] %vm2902_vm6, %v677_v29  ;;  %v762_v56 = vpop.permute.xlu0 %761  ;;  %1607 = vperm.xlu0 %2599, %v1604_v52  }
 0x1b0   :  { %682 = vst [vmem:[#allocation4 + $0x38] sm:$0x33] %v676_v32  ;;  %v765_v34 = vrot.slane %v762_v56, 4 }
 0x1b1   :  { %1185 = vrot.lane.b32.xlu1 %v1180_v30, %s2780_s29 }
 0x1b2   :  { %v769_v35 = vsel %vm577_vm7, %v764_v18, %v765_v34  ;;  %v771_v36 = vsel %vm3406_vm5, %v762_v56, %v765_v34 }
 0x1b3   :  { %v770_v40 = vsel %vm3406_vm5, %v760_v11, %v769_v35  ;;  %777 = vst.msk [vmem:[#allocation4 + $0x58] sm:$0x33] %vm2902_vm6, %v771_v36  ;;  %v569_v41 = vpop.permute.xlu0 %568 }
 0x1b4   :  { %776 = vst [vmem:[#allocation4 + $0x50] sm:$0x33] %v770_v40  ;;  %v574_v42 = vrot.slane %v569_v41, 4 }
 0x1b5   :  { %903 = vrot.lane.b32.xlu1 %v898_v38, %s2781_s30 }
 0x1b6   :  { %v578_v43 = vsel %vm577_vm7, %v574_v42, %v575_v37 }
 0x1b7   :  { %v580_v46 = vsel %vm3408_vm9, %v569_v41, %v578_v43 }
 0x1b8   :  { %587 = vst [vmem:[#allocation4 + $0x18] sm:$0x33] %v580_v46 }
 0x1b9   :  { %997 = vrot.lane.b32.xlu1 %v992_v44, %s2782_s11 }
 0x1bd   :  { %715 = vrot.lane.b32.xlu1 %v710_v47, %s2783_s12 }
 0x1c1   :  { %809 = vrot.lane.b32.xlu1 %v804_v49, %s2784_s13 }
 0x1c5   :  { %621 = vrot.lane.b32.xlu1 %v616_v51, %s2786_s15 }
 0x1c9   :  { %1619 = vperm.xlu1 %2600, %v1616_v53  }
 0x1fb   :  { %v3071_v54 = vpop.permute.xlu1 %1277 }
 0x1fc   :  { %v1282_v58 = vrot.slane %v3071_v54, 4 }
 0x1fd   :  { %v1276_v55 = vpop.permute.xlu0 %1275 }
 0x1fe   :  { %v1281_v59 = vrot.slane %v1276_v55, 4 }
 0x1ff   :  { %v3074_v60 = vpop.permute.xlu1 %1089 }
 0x200   :  { %v1284_v61 = vsel %vm577_vm7, %v1281_v59, %v1282_v58  ;;  %v1094_v2 = vrot.slane %v3074_v60, 4 }
 0x201   :  { %v1285_v62 = vsel %vm1237_vm8, %v1276_v55, %v1284_v61  ;;  %v1088_v63 = vpop.permute.xlu0 %1087 }
 0x202   :  { %1292 = vst [vmem:[#allocation4 + $0xc0] sm:$0xcc] %v1285_v62  ;;  %v1093_v3 = vrot.slane %v1088_v63, 4 }
 0x203   :  { %v3081_v4 = vpop.permute.xlu1 %1183 }
 0x204   :  { %v1096_v5 = vsel %vm577_vm7, %v1093_v3, %v1094_v2  ;;  %v1188_v8 = vrot.slane %v3081_v4, 4 }
 0x205   :  { %v1097_v6 = vsel %vm3407_vm14, %v1088_v63, %v1096_v5  ;;  %v1182_v7 = vpop.permute.xlu0 %1181 }
 0x206   :  { %1104 = vst [vmem:[#allocation4 + $0x90] sm:$0xcc] %v1097_v6  ;;  %v1187_v9 = vrot.slane %v1182_v7, 4 }
 0x207   :  { %v3088_v10 = vpop.permute.xlu1 %901 }
 0x208   :  { %v1190_v11 = vsel %vm577_vm7, %v1187_v9, %v1188_v8  ;;  %v906_v15 = vrot.slane %v3088_v10, 4 }
 0x209   :  { %v1191_v12 = vsel %vm1143_vm10, %v1182_v7, %v1190_v11  ;;  %v900_v13 = vpop.permute.xlu0 %899  ;;  %v1320_v14 = vld [vmem:[#allocation4 + $0xc0] sm:$0xff] }
 0x20a   :  { %1198 = vst [vmem:[#allocation4 + $0xa8] sm:$0xcc] %v1191_v12  ;;  %v905_v16 = vrot.slane %v900_v13, 4  ;;  %v2499_v17 = vcombine.high %v1320_v14, %v1320_v14  ;;  %v2498_v18 = vcombine.low %v1320_v14, %v1320_v14 }
 0x20b   :  { %v3095_v19 = vpop.permute.xlu1 %995 }
 0x20c   :  { %v908_v21 = vsel %vm577_vm7, %v905_v16, %v906_v15  ;;  %2504 = vmatprep.subr.msk.bf16.mxu0 %vm577_vm7, %v2499_v17  ;;  %v1464_v22 = vsel %vm577_vm7, %v2498_v18, 0  ;;  %v1000_v27 = vrot.slane %v3095_v19, 4 }
 0x20d   :  { %v909_v23 = vsel %vm861_vm0, %v900_v13, %v908_v21  ;;  %1488 = vmatpush1.bf16.msra.mxu0 %v1464_v22  ;;  %v994_v26 = vpop.permute.xlu0 %993 }
 0x20e   :  { %916 = vst [vmem:[#allocation4 + $0x60] sm:$0xcc] %v909_v23  ;;  %v999_v28 = vrot.slane %v994_v26, 4 }
 0x20f   :  { %v3104_v29 = vpop.permute.xlu1 %713 }
 0x210   :  { %v1002_v30 = vsel %vm577_vm7, %v999_v28, %v1000_v27  ;;  %v718_v35 = vrot.slane %v3104_v29, 4 }
 0x211   :  { %v1003_v31 = vsel %vm955_vm3, %v994_v26, %v1002_v30  ;;  %v712_v32 = vpop.permute.xlu0 %711  ;;  %v2634_v56 = vld [vmem:[#allocation4 + $0x90] ss:$24 sps:$4 sm:$0xff]   ;;  %v2636_v34 = vld [vmem:[#allocation4 + $0x94] ss:$24 sps:$4 sm:$0xff]  }
 0x212   :  { %1010 = vst [vmem:[#allocation4 + $0x78] sm:$0xcc] %v1003_v31  ;;  %v717_v36 = vrot.slane %v712_v32, 4  ;;  %1489 = vmatprep.subr.bf16.mxu0 %v2636_v34 }
 0x213   :  { %v3111_v38 = vpop.permute.xlu1 %807  ;;  %1490 = vmatpush1.bf16.msra.mxu0 %v2634_v56 }
 0x214   :  { %v720_v39 = vsel %vm577_vm7, %v717_v36, %v718_v35  ;;  %v812_v42 = vrot.slane %v3111_v38, 4 }
 0x215   :  { %v721_v40 = vsel %vm3405_vm4, %v712_v32, %v720_v39  ;;  %v806_v41 = vpop.permute.xlu0 %805 }
 0x216   :  { %728 = vst [vmem:[#allocation4 + $0x30] sm:$0xcc] %v721_v40  ;;  %v811_v43 = vrot.slane %v806_v41, 4 }
 0x217   :  { %v3118_v44 = vpop.permute.xlu1 %619 }
 0x218   :  { %v814_v45 = vsel %vm577_vm7, %v811_v43, %v812_v42  ;;  %v624_v50 = vrot.slane %v3118_v44, 4 }
 0x219   :  { %v815_v46 = vsel %vm3406_vm5, %v806_v41, %v814_v45  ;;  %v618_v47 = vpop.permute.xlu0 %617  ;;  %v2637_v48 = vld [vmem:[#allocation4 + $0x60] ss:$24 sps:$4 sm:$0xff]   ;;  %v2639_v49 = vld [vmem:[#allocation4 + $0x64] ss:$24 sps:$4 sm:$0xff]  }
 0x21a   :  { %822 = vst [vmem:[#allocation4 + $0x48] sm:$0xcc] %v815_v46  ;;  %v623_v51 = vrot.slane %v618_v47, 4  ;;  %1491 = vmatprep.subr.bf16.mxu0 %v2639_v49 }
 0x21b   :  { %v1280_v52 = vpop.permute.xlu1 %1279  ;;  %1492 = vmatpush1.bf16.msra.mxu0 %v2637_v48 }
 0x21c   :  { %v626_v53 = vsel %vm577_vm7, %v623_v51, %v624_v50  ;;  %v1283_v55 = vrot.slane %v1280_v52, 4 }
 0x21d   :  { %v627_v59 = vsel %vm3408_vm9, %v618_v47, %v626_v53  ;;  %v573_v61 = vpop.permute.xlu0 %572 }
 0x21e   :  { %634 = vst [vmem:[#allocation4 + $0x18] sm:$0xcc] %v627_v59  ;;  %v1286_v62 = vsel %vm577_vm7, %v1282_v58, %v1283_v55  ;;  %v1288_v63 = vsel %vm1237_vm8, %v1280_v52, %v1283_v55  ;;  %v576_v3 = vrot.slane %v573_v61, 4 }
 0x21f   :  { %v1287_v5 = vsel %vm1237_vm8, %v3071_v54, %v1286_v62  ;;  %1294 = vst.msk [vmem:[#allocation4 + $0xd0] sm:$0xcc] %vm2954_vm15, %v1288_v63  ;;  %v1092_v6 = vpop.permute.xlu1 %1091 }
 0x220   :  { %1293 = vst [vmem:[#allocation4 + $0xc8] sm:$0xcc] %v1287_v5  ;;  %v581_v7 = vsel %vm577_vm7, %v575_v37, %v576_v3  ;;  %v583_v9 = vsel %vm3408_vm9, %v573_v61, %v576_v3  ;;  %v1095_v11 = vrot.slane %v1092_v6, 4 }
 0x221   :  { %v582_v58 = vsel %vm3408_vm9, %v3042_v33, %v581_v7  ;;  %589 = vst.msk [vmem:[#allocation4 + $0x28] sm:$0x33] %vm2902_vm6, %v583_v9  ;;  %v2640_v12 = vld [vmem:[#allocation4 + $0x30] ss:$24 sps:$4 sm:$0xff]   ;;  %v2642_v54 = vld [vmem:[#allocation4 + $0x34] ss:$24 sps:$4 sm:$0xff]  }
 0x222   :  { %588 = vst [vmem:[#allocation4 + $0x20] sm:$0x33] %v582_v58  ;;  %v1098_v13 = vsel %vm577_vm7, %v1094_v2, %v1095_v11  ;;  %v1100_v14 = vsel %vm3407_vm14, %v1092_v6, %v1095_v11  ;;  %1493 = vmatprep.subr.bf16.mxu0 %v2642_v54 }
 0x223   :  { %v1099_v37 = vsel %vm3407_vm14, %v3074_v60, %v1098_v13  ;;  %1106 = vst.msk [vmem:[#allocation4 + $0xa0] sm:$0xcc] %vm2954_vm15, %v1100_v14  ;;  %v1186_v16 = vpop.permute.xlu1 %1185  ;;  %1494 = vmatpush1.bf16.msra.mxu0 %v2640_v12 }
 0x224   :  { %1105 = vst [vmem:[#allocation4 + $0x98] sm:$0xcc] %v1099_v37  ;;  %v1189_v33 = vrot.slane %v1186_v16, 4 }
 0x225   :  { %v2643_v17 = vld [vmem:[#allocation4] ss:$24 sps:$4 sm:$0xff]   ;;  %v2645_v18 = vld [vmem:[#allocation4 + $0x4] ss:$24 sps:$4 sm:$0xff]  }
 0x226   :  { %v1192_v21 = vsel %vm577_vm7, %v1188_v8, %v1189_v33  ;;  %v1194_v2 = vsel %vm1143_vm10, %v1186_v16, %v1189_v33  ;;  %v1322_v22 = vld [vmem:[#allocation4 + $0xd0] sm:$0xff]  ;;  %1495 = vmatprep.subr.bf16.mxu0 %v2645_v18  ;;  %v3164_v8 = vld [vmem:[%s3397_s3] sm:$0x3] }
 0x227   :  { %v1193_v60 = vsel %vm1143_vm10, %v3081_v4, %v1192_v21  ;;  %1200 = vst.msk [vmem:[#allocation4 + $0xb8] sm:$0xcc] %vm2954_vm15, %v1194_v2  ;;  %v904_v23 = vpop.permute.xlu1 %903  ;;  %v1321_v26 = vld [vmem:[#allocation4 + $0xc8] sm:$0xff]  ;;  %v2503_v28 = vcombine.high %v1322_v22, %v1322_v22  ;;  %v2502_v30 = vcombine.low %v1322_v22, %v1322_v22  ;;  %1496 = vmatpush1.bf16.msra.mxu0 %v2643_v17 }
 0x228   :  { %1199 = vst [vmem:[#allocation4 + $0xb0] sm:$0xcc] %v1193_v60  ;;  %v907_v31 = vrot.slane %v904_v23, 4  ;;  %v2501_v32 = vcombine.high %v1321_v26, %v1321_v26  ;;  %v2500_v56 = vcombine.low %v1321_v26, %v1321_v26  ;;  %v1638_v60 = vsub.s32 0, %v2864_v24 }
 0x229   :  { %2508 = vmatprep.subr.msk.bf16.mxu0 %vm577_vm7, %v2503_v28  ;;  %v1476_v41 = vsel %vm577_vm7, %v2502_v30, 0  ;;  %v1634_v28 = vld [vmem:[%s3403_s9] sm:$0x3f]  ;;  %v1642_v30 = vsub.s32 1, %v2864_v24 }
 0x22a   :  { %v910_v4 = vsel %vm577_vm7, %v906_v15, %v907_v31  ;;  %v912_v34 = vsel %vm861_vm0, %v904_v23, %v907_v31  ;;  %2506 = vmatprep.subr.msk.bf16.mxu1 %vm577_vm7, %v2501_v32  ;;  %v1470_v36 = vsel %vm577_vm7, %v2500_v56, 0  ;;  %2505 = vmatmul.mubr.msk.bf16.vlgmr.msra.gmra.mxu0 %vm1458_vm12, %v3164_v8  ;;  %v1608_v18 = vpop.permute.xlu0 %1607  ;;  %v1654_v31 = vsub.s32 4, %v2864_v24 }
 0x22b   :  { %v911_v39 = vsel %vm861_vm0, %v3088_v10, %v910_v4  ;;  %918 = vst.msk [vmem:[#allocation4 + $0x70] sm:$0xcc] %vm2954_vm15, %v912_v34  ;;  %1529 = vmatpush1.bf16.msra.mxu1 %v1470_v36  ;;  %v998_v40 = vpop.permute.xlu1 %997  ;;  %1570 = vmatpush1.bf16.msra.mxu0 %v1476_v41  ;;  %v1646_v56 = vsub.s32 2, %v2864_v24  ;;  %v1650_v34 = vsub.s32 3, %v2864_v24  ;;  %v1658_v36 = vsub.s32 5, %v2864_v24 }
 0x22c   :  { %917 = vst [vmem:[#allocation4 + $0x68] sm:$0xcc] %v911_v39  ;;  %v1001_v15 = vrot.slane %v998_v40, 4  ;;  %1595 = vmatprep.mubr.bf16.mxu0 %v2776_v1  ;;  %v1639_v39 = vrot.slane %v1634_v28, %v1638_v60 }
 0x22e   :  { %v1004_v43 = vsel %vm577_vm7, %v1000_v27, %v1001_v15  ;;  %v1006_v10 = vsel %vm955_vm3, %v998_v40, %v1001_v15  ;;  %v2649_v45 = vld [vmem:[#allocation4 + $0xa0] ss:$24 sps:$4 sm:$0xff]   ;;  %v2651_v46 = vld [vmem:[#allocation4 + $0xa4] ss:$24 sps:$4 sm:$0xff]  }
 0x22f   :  { %v1005_v47 = vsel %vm955_vm3, %v3095_v19, %v1004_v43  ;;  %1012 = vst.msk [vmem:[#allocation4 + $0x88] sm:$0xcc] %vm2954_vm15, %v1006_v10  ;;  %v716_v48 = vpop.permute.xlu1 %715  ;;  %v2652_v49 = vld [vmem:[#allocation4 + $0x98] ss:$24 sps:$4 sm:$0xff]   ;;  %v2654_v51 = vld [vmem:[#allocation4 + $0x9c] ss:$24 sps:$4 sm:$0xff]   ;;  %1571 = vmatprep.subr.bf16.mxu0 %v2651_v46  ;;  %v1643_v10 = vrot.slane %v1634_v28, %v1642_v30 }
 0x230   :  { %1011 = vst [vmem:[#allocation4 + $0x80] sm:$0xcc] %v1005_v47  ;;  %v719_v52 = vrot.slane %v716_v48, 4  ;;  %1530 = vmatprep.subr.bf16.mxu1 %v2654_v51  ;;  %1572 = vmatpush1.bf16.msra.mxu0 %v2649_v45 }
 0x231   :  { %1531 = vmatpush1.bf16.msra.mxu1 %v2652_v49 }
 0x232   :  { %v722_v1 = vsel %vm577_vm7, %v718_v35, %v719_v52  ;;  %v724_v27 = vsel %vm3405_vm4, %v716_v48, %v719_v52  ;;  %v1655_v48 = vrot.slane %v1634_v28, %v1654_v31  ;;  %v1647_v52 = vrot.slane %v1634_v28, %v1646_v56 }
 0x233   :  { %v723_v19 = vsel %vm3405_vm4, %v3104_v29, %v722_v1  ;;  %730 = vst.msk [vmem:[#allocation4 + $0x40] sm:$0xcc] %vm2954_vm15, %v724_v27  ;;  %v810_v53 = vpop.permute.xlu1 %809  ;;  %v1651_v27 = vrot.slane %v1634_v28, %v1650_v34  ;;  %vm1722_vm4 = vcmask 1047558  }
 0x234   :  { %729 = vst [vmem:[#allocation4 + $0x38] sm:$0xcc] %v723_v19  ;;  %v813_v55 = vrot.slane %v810_v53, 4 }
 0x236   :  { %v816_v59 = vsel %vm577_vm7, %v812_v42, %v813_v55  ;;  %v818_v61 = vsel %vm3406_vm5, %v810_v53, %v813_v55  ;;  %v2655_v62 = vld [vmem:[#allocation4 + $0x70] ss:$24 sps:$4 sm:$0xff]   ;;  %v2657_v35 = vld [vmem:[#allocation4 + $0x74] ss:$24 sps:$4 sm:$0xff]   ;;  %v1659_v53 = vrot.slane %v1634_v28, %v1658_v36 }
 0x237   :  { %v817_v63 = vsel %vm3406_vm5, %v3111_v38, %v816_v59  ;;  %824 = vst.msk [vmem:[#allocation4 + $0x58] sm:$0xcc] %vm2954_vm15, %v818_v61  ;;  %v622_v29 = vpop.permute.xlu1 %621  ;;  %v2658_v3 = vld [vmem:[#allocation4 + $0x68] ss:$24 sps:$4 sm:$0xff]   ;;  %v2660_v5 = vld [vmem:[#allocation4 + $0x6c] ss:$24 sps:$4 sm:$0xff]   ;;  %1573 = vmatprep.subr.bf16.mxu0 %v2657_v35 }
 0x238   :  { %823 = vst [vmem:[#allocation4 + $0x50] sm:$0xcc] %v817_v63  ;;  %v625_v6 = vrot.slane %v622_v29, 4  ;;  %1532 = vmatprep.subr.bf16.mxu1 %v2660_v5  ;;  %1574 = vmatpush1.bf16.msra.mxu0 %v2655_v62  ;;  %vm1725_vm5 = vcmask 216066  }
 0x239   :  { %1533 = vmatpush1.bf16.msra.mxu1 %v2658_v3 }
 0x23a   :  { %v628_v42 = vsel %vm577_vm7, %v624_v50, %v625_v6  ;;  %v630_v7 = vsel %vm3408_vm9, %v622_v29, %v625_v6 }
 0x23b   :  { %v629_v38 = vsel %vm3408_vm9, %v3118_v44, %v628_v42  ;;  %636 = vst.msk [vmem:[#allocation4 + $0x28] sm:$0xcc] %vm2954_vm15, %v630_v7  ;;  %v3217_v44 = vld [vmem:[#allocation3] sm:$0xff]  ;;  %vm1726_vm9 = vmor %vm1725_vm5, %vm66_vm2 }
 0x23c   :  { %635 = vst [vmem:[#allocation4 + $0x20] sm:$0xcc] %v629_v38 }
 0x23e   :  { %v2661_v9 = vld [vmem:[#allocation4 + $0x40] ss:$24 sps:$4 sm:$0xff]   ;;  %v2663_v11 = vld [vmem:[#allocation4 + $0x44] ss:$24 sps:$4 sm:$0xff]  }
 0x23f   :  { %v2664_v58 = vld [vmem:[#allocation4 + $0x38] ss:$24 sps:$4 sm:$0xff]   ;;  %v2666_v12 = vld [vmem:[#allocation4 + $0x3c] ss:$24 sps:$4 sm:$0xff]   ;;  %1575 = vmatprep.subr.bf16.mxu0 %v2663_v11 }
 0x240   :  { %1534 = vmatprep.subr.bf16.mxu1 %v2666_v12  ;;  %1576 = vmatpush1.bf16.msra.mxu0 %v2661_v9 }
 0x241   :  { %1535 = vmatpush1.bf16.msra.mxu1 %v2664_v58 }
 0x242   :  { %v2667_v54 = vld [vmem:[#allocation4 + $0x10] ss:$24 sps:$4 sm:$0xff]   ;;  %v2669_v50 = vld [vmem:[#allocation4 + $0x14] ss:$24 sps:$4 sm:$0xff]  }
 0x243   :  { %v2670_v13 = vld [vmem:[#allocation4 + $0x8] ss:$24 sps:$4 sm:$0xff]   ;;  %v2672_v14 = vld [vmem:[#allocation4 + $0xc] ss:$24 sps:$4 sm:$0xff]   ;;  %1577 = vmatprep.subr.bf16.mxu0 %v2669_v50 }
 0x244   :  { %1536 = vmatprep.subr.bf16.mxu1 %v2672_v14  ;;  %1578 = vmatpush1.bf16.msra.mxu0 %v2667_v54  ;;  %v1620_v22 = vpop.permute.xlu1 %1619 }
 0x245   :  { %1537 = vmatpush1.bf16.msra.mxu1 %v2670_v13 }
 0x247   :  { %2509 = vmatmul.mubr.msk.bf16.vlgmr.msra.gmra.mxu0 %vm1458_vm12, %v3164_v8 }
 0x248   :  { %2507 = vmatmul.mubr.msk.bf16.vlgmr.msra.gmra.mxu1 %vm1458_vm12, %v3164_v8  ;;  %2359 = vmatprep.mubr.bf16.mxu0 %v3217_v44  ;;  %vm1721_vm12 = vmor %vm468_vm1, %vm2938_vm11  ;;  %vm3415_vm11 = vcmask 1039360   ;;  %vm3417_vm1 = vcmask 900096  }
 0x249   :  { %2277 = vmatprep.mubr.bf16.mxu1 %v3217_v44  ;;  %vm1723_vm14 = vmor %vm1722_vm4, %vm1721_vm12  ;;  %vm2223_vm4 = vcmask 293888  }
 0x2ea   :  { %v1515_v37 = vpop.f32.mrf.mxu0 }
 0x2eb   :  { %v1610_v21 = vmul.f32 %v1608_v18, %v1515_v37 }
 0x2ec   :  { %v1517_v16 = vpop.f32.mrf.mxu0 }
 0x2ed   :  { %v1611_v2 = vmul.f32 %v1608_v18, %v1517_v16  ;;  %v1622_v23 = vadd.f32 %v1620_v22, %v1610_v21 }
 0x2ee   :  { %v1519_v33 = vpop.f32.mrf.mxu0 }
 0x2ef   :  { %v1623_v26 = vadd.f32 %v1620_v22, %v1611_v2  ;;  %v1628_v15 = vmax.f32 %v1622_v23, 0.0 }
 0x2f0   :  { %v1520_v17 = vpop.f32.mrf.mxu0 }
 0x2f1   :  { %v1629_v43 = vmax.f32 %v1623_v26, 0.0  ;;  %v1666_v62 = vmul.f32 %v1639_v39, %v1628_v15  ;;  %v2368_v39 = vld [vmem:[%s3401_s7] sm:$0xf] }
 0x2f3   :  { %v1667_v35 = vmul.f32 %v1643_v10, %v1629_v43 }
 0x2f5   :  { %v2510_v9 = vpack.c.bf16 %v1667_v35, %v1666_v62 }
 0x2f7   :  { %v1692_v54 = vrot.slane %v2510_v9, %v2867_v25 }
 0x307   :  { %v1597_v32 = vpop.f32.mrf.mxu0 }
 0x308   :  { %v1556_v8 = vpop.f32.mrf.mxu1  ;;  %v1614_v4 = vmul.f32 %v1608_v18, %v1597_v32 }
 0x309   :  { %v1612_v40 = vmul.f32 %v1608_v18, %v1556_v8  ;;  %v1599_v41 = vpop.f32.mrf.mxu0 }
 0x30a   :  { %v1558_v45 = vpop.f32.mrf.mxu1  ;;  %v1615_v46 = vmul.f32 %v1608_v18, %v1599_v41  ;;  %v1626_v47 = vadd.f32 %v1620_v22, %v1614_v4 }
 0x30b   :  { %v1613_v49 = vmul.f32 %v1608_v18, %v1558_v45  ;;  %v1624_v51 = vadd.f32 %v1620_v22, %v1612_v40  ;;  %v1601_v1 = vpop.f32.mrf.mxu0  ;;  %v2380_v40 = vld [vmem:[%s3402_s8] sm:$0xf] }
 0x30c   :  { %v1627_v19 = vadd.f32 %v1620_v22, %v1615_v46  ;;  %v1560_v55 = vpop.f32.mrf.mxu1  ;;  %v1632_v59 = vmax.f32 %v1626_v47, 0.0 }
 0x30d   :  { %v1625_v24 = vadd.f32 %v1620_v22, %v1613_v49  ;;  %v1630_v61 = vmax.f32 %v1624_v51, 0.0  ;;  %v1602_v63 = vpop.f32.mrf.mxu0 }
 0x30e   :  { %v1633_v29 = vmax.f32 %v1627_v19, 0.0  ;;  %v1561_v3 = vpop.f32.mrf.mxu1  ;;  %v1670_v5 = vmul.f32 %v1655_v48, %v1632_v59 }
 0x30f   :  { %v1631_v6 = vmax.f32 %v1625_v24, 0.0  ;;  %v1668_v7 = vmul.f32 %v1647_v52, %v1630_v61 }
 0x310   :  { %v1671_v42 = vmul.f32 %v1659_v53, %v1633_v29 }
 0x311   :  { %v1669_v38 = vmul.f32 %v1651_v27, %v1631_v6 }
 0x312   :  { %v2512_v11 = vpack.c.bf16 %v1671_v42, %v1670_v5 }
 0x313   :  { %v2511_v58 = vpack.c.bf16 %v1669_v38, %v1668_v7 }
 0x314   :  { %v1708_v12 = vrot.slane %v2512_v11, %v2867_v25 }
 0x315   :  { %v1699_v50 = vrot.slane %v2511_v58, %v2867_v25 }
 0x316   :  { %1711 = vrot.lane.b32.xlu0 %v1708_v12, %s2785_s14 }
 0x317   :  { %v1700_v13 = vcombine.low %v1692_v54, %v1699_v50 }
 0x319   :  { %1709 = vrot.lane.b32.xlu1 %v1700_v13, %s2785_s14 }
 0x388   :  { %v1712_v14 = vpop.permute.xlu0 %1711 }
 0x389   :  { %v1714_v16 = vrot.slane %v1712_v14, 6 }
 0x38b   :  { %v1710_v37 = vpop.permute.xlu1 %1709 }
 0x38c   :  { %v1713_v33 = vrot.slane %v1710_v37, 6 }
 0x38e   :  { %v1715_v17 = vsel %vm263_vm13, %v1713_v33, %v1710_v37  ;;  %v1717_v18 = vsel %vm66_vm2, %v1713_v33, %v1714_v16 }
 0x38f   :  { %v1718_v21 = vsel %vm263_vm13, %v1717_v18, %v1712_v14  ;;  %1724 = vst.msk [vmem:[#allocation3] sm:$0xff] %vm1723_vm14, %v1715_v17  ;;  %vm3416_vm13 = vcmask 752640   ;;  %vm3418_vm14 = vcmask 1031168  }
 0x390   :  { %1727 = vst.msk [vmem:[#allocation3 + $0x8] sm:$0xf] %vm1726_vm9, %v1718_v21  ;;  %vm3424_vm9 = vmmov %vm3417_vm1 }
 0x396   :  { %v1728_v2 = vld [vmem:[#allocation3] sm:$0xff] }
 0x397   :  { %v1732_v0 = vcombine.high %v1728_v2, %v1728_v2  ;;  %2514 = vst.sshfl [vmem:[#allocation5] sm:$0xf pattern:$0x76325410] %v1728_v2  ;;  %v2097_v22 = vrot.slane %v1728_v2, %v2867_v25  ;;  %v1950_v23 = vcombine.low %v1728_v2, %v1728_v2  ;;  %v2674_v30 = vld [vmem:[#allocation3 + $0x8] ss:$0 sps:$4 sm:$0xff]  }
 0x398   :  { %v2519_v60 = vld.sshfl [vmem:[#allocation3 + $0x8] sm:$0x33 pattern:$0x76325410]  ;;  %v1972_v31 = vrot.slane %v2674_v30, %v2867_v25 }
 0x399   :  { %1759 = vst.msk [vmem:[#allocation5 + $0x10] sm:$0x33] %vm2902_vm6, %v2519_v60  ;;  %2515 = vst.sshfl [vmem:[#allocation5 + $0x8] sm:$0xf pattern:$0x76325410] %v1732_v0  ;;  %2112 = vrot.lane.b32.xlu1 %v2097_v22, %s2778_s27  ;;  %1975 = vrot.lane.b32.xlu0 %v2097_v22, %s2782_s11  ;;  %v1957_v26 = vrot.slane %v1950_v23, %v2867_v25  ;;  %v2104_v28 = vrot.slane %v1732_v0, %v2867_v25 }
 0x39a   :  { %v2675_v32 = vld [vmem:[#allocation3 + $0x8] ss:$0 sps:$4 sm:$0xff]  }
 0x39b   :  { %v2676_v56 = vld [vmem:[#allocation3 + $0x8] ss:$0 sps:$4 sm:$0xff]   ;;  %v2065_v8 = vrot.slane %v2675_v32, %v2867_v25 }
 0x39c   :  { %v1786_v4 = vrot.slane %v2676_v56, %v2867_v25  ;;  %v2677_v34 = vld [vmem:[#allocation3 + $0x8] ss:$0 sps:$4 sm:$0xff]  }
 0x39d   :  { %1926 = vrot.lane.b32.xlu1 %v2097_v22, %s2781_s30  ;;  %2068 = vrot.lane.b32.xlu0 %v2097_v22, %s2780_s29  ;;  %v1879_v36 = vrot.slane %v2677_v34, %v2867_v25 }
 0x3a1   :  { %2019 = vrot.lane.b32.xlu1 %v2097_v22, %s2779_s28  ;;  %1789 = vrot.lane.b32.xlu0 %v2097_v22, %s2786_s15 }
 0x3a5   :  { %1833 = vrot.lane.b32.xlu1 %v2097_v22, %s2783_s12  ;;  %1882 = vrot.lane.b32.xlu0 %v2097_v22, %s2784_s13 }
 0x3a9   :  { %1973 = vrot.lane.b32.xlu1 %v1957_v26, %s2782_s11  ;;  %2114 = vrot.lane.b32.xlu0 %v2104_v28, %s2778_s27 }
 0x3ad   :  { %2066 = vrot.lane.b32.xlu1 %v1957_v26, %s2780_s29  ;;  %1928 = vrot.lane.b32.xlu0 %v2104_v28, %s2781_s30 }
 0x3b1   :  { %1787 = vrot.lane.b32.xlu1 %v1957_v26, %s2786_s15  ;;  %2021 = vrot.lane.b32.xlu0 %v2104_v28, %s2779_s28 }
 0x3b5   :  { %1880 = vrot.lane.b32.xlu1 %v1957_v26, %s2784_s13  ;;  %1835 = vrot.lane.b32.xlu0 %v2104_v28, %s2783_s12 }
 0x3b9   :  { %2116 = vrot.lane.b32.xlu1 %v2519_v60, %s2778_s27  ;;  %1930 = vrot.lane.b32.xlu0 %v2519_v60, %s2781_s30 }
 0x3bd   :  { %1977 = vrot.lane.b32.xlu1 %v1972_v31, %s2782_s11  ;;  %2023 = vrot.lane.b32.xlu0 %v2519_v60, %s2779_s28 }
 0x3c1   :  { %2070 = vrot.lane.b32.xlu1 %v2065_v8, %s2780_s29  ;;  %1791 = vrot.lane.b32.xlu0 %v1786_v4, %s2786_s15 }
 0x3c5   :  { %1837 = vrot.lane.b32.xlu1 %v2519_v60, %s2783_s12  ;;  %1884 = vrot.lane.b32.xlu0 %v1879_v36, %s2784_s13 }
 0x3c9   :  { %2371 = vperm.xlu1 %2600, %v2368_v39   ;;  %2383 = vperm.xlu0 %2599, %v2380_v40  }
 0x40b   :  { %v2113_v41 = vpop.permute.xlu1 %2112  ;;  %v3281_v15 = vpop.permute.xlu0 %1975 }
 0x40c   :  { %v2118_v51 = vrot.slane %v2113_v41, 4  ;;  %v1980_v52 = vrot.slane %v3281_v15, 4 }
 0x40f   :  { %v1927_v43 = vpop.permute.xlu1 %1926  ;;  %v3283_v10 = vpop.permute.xlu0 %2068 }
 0x410   :  { %v1932_v62 = vrot.slane %v1927_v43, 4  ;;  %v2073_v35 = vrot.slane %v3283_v10, 4 }
 0x413   :  { %v2020_v25 = vpop.permute.xlu1 %2019  ;;  %v3285_v45 = vpop.permute.xlu0 %1789 }
 0x414   :  { %v2025_v9 = vrot.slane %v2020_v25, 4  ;;  %v1794_v11 = vrot.slane %v3285_v45, 4 }
 0x417   :  { %v1834_v46 = vpop.permute.xlu1 %1833  ;;  %v3287_v47 = vpop.permute.xlu0 %1882 }
 0x418   :  { %v1839_v13 = vrot.slane %v1834_v46, 4  ;;  %v1887_v14 = vrot.slane %v3287_v47, 4 }
 0x41b   :  { %v1974_v48 = vpop.permute.xlu1 %1973  ;;  %v2115_v49 = vpop.permute.xlu0 %2114 }
 0x41c   :  { %v1979_v1 = vrot.slane %v1974_v48, 4  ;;  %v2119_v27 = vrot.slane %v2115_v49, 4 }
 0x41e   :  { %v1982_v19 = vsel %vm577_vm7, %v1979_v1, %v1980_v52  ;;  %v2121_v53 = vsel %vm577_vm7, %v2118_v51, %v2119_v27 }
 0x41f   :  { %v1983_v55 = vsel %vm955_vm3, %v1974_v48, %v1982_v19  ;;  %v2122_v59 = vsel %vm1237_vm8, %v2113_v41, %v2121_v53  ;;  %v2067_v24 = vpop.permute.xlu1 %2066  ;;  %v1929_v61 = vpop.permute.xlu0 %1928 }
 0x420   :  { %1990 = vst [vmem:[#allocation5 + $0x30] sm:$0xcc] %v1983_v55  ;;  %2129 = vst [vmem:[#allocation5 + $0x60] sm:$0x33] %v2122_v59  ;;  %v2072_v63 = vrot.slane %v2067_v24, 4  ;;  %v1933_v29 = vrot.slane %v1929_v61, 4 }
 0x422   :  { %v2075_v3 = vsel %vm577_vm7, %v2072_v63, %v2073_v35  ;;  %v1935_v5 = vsel %vm577_vm7, %v1932_v62, %v1933_v29 }
 0x423   :  { %v2076_v6 = vsel %vm1143_vm10, %v2067_v24, %v2075_v3  ;;  %v1936_v42 = vsel %vm861_vm0, %v1927_v43, %v1935_v5  ;;  %v1788_v7 = vpop.permute.xlu1 %1787  ;;  %v2022_v38 = vpop.permute.xlu0 %2021 }
 0x424   :  { %2083 = vst [vmem:[#allocation5 + $0x48] sm:$0xcc] %v2076_v6  ;;  %1943 = vst [vmem:[#allocation5 + $0x30] sm:$0x33] %v1936_v42  ;;  %v1793_v58 = vrot.slane %v1788_v7, 4  ;;  %v2026_v12 = vrot.slane %v2022_v38, 4 }
 0x426   :  { %v1796_v54 = vsel %vm577_vm7, %v1793_v58, %v1794_v11  ;;  %v2028_v50 = vsel %vm577_vm7, %v2025_v9, %v2026_v12 }
 0x427   :  { %v1797_v37 = vsel %vm3415_vm11, %v1788_v7, %v1796_v54  ;;  %v2029_v16 = vsel %vm3416_vm13, %v2020_v25, %v2028_v50  ;;  %v1881_v33 = vpop.permute.xlu1 %1880  ;;  %v3311_v17 = vpop.permute.xlu0 %1835  ;;  %v2145_v18 = vld [vmem:[#allocation5 + $0x60] sm:$0x33]  ;;  %v2132_v7 = vld [vmem:[%s3400_s6] sm:$0x3]  ;;  %s2788_s6 = smov [#allocation11]  }
 0x428   :  { %1804 = vst [vmem:[#allocation5] sm:$0xcc] %v1797_v37  ;;  %2036 = vst [vmem:[#allocation5 + $0x48] sm:$0x33] %v2029_v16  ;;  %v1886_v21 = vrot.slane %v1881_v33, 4  ;;  %v1840_v2 = vrot.slane %v3311_v17, 4  ;;  %v2533_v0 = vcombine.high %v2145_v18, %v2145_v18  ;;  %v2532_v22 = vcombine.low %v2145_v18, %v2145_v18 }
 0x429   :  { %s2421_s26 = sshll.u32 %s2788_s6, 4  ;;  %s2422_s26 = int_to_ptr.vmem [resolvable:$true] %s2421_s26 }
 0x42a   :  { %v1889_v60 = vsel %vm577_vm7, %v1886_v21, %v1887_v14  ;;  %v1842_v23 = vsel %vm577_vm7, %v1839_v13, %v1840_v2  ;;  %2538 = vmatprep.subr.msk.bf16.mxu1 %vm66_vm2, %v2533_v0  ;;  %v2228_v26 = vsel %vm66_vm2, %v2532_v22, 0  ;;  %s2742_s0 = scalar_lea.vmem %s2422_s26, 384  ;;  %p2747_p11 = scmp.lt.s32.totalorder %s2422_s26, %s2422_s26 }
 0x42b   :  { %v1890_v28 = vsel %vm3417_vm1, %v1881_v33, %v1889_v60  ;;  %v1843_v30 = vsel %vm3418_vm14, %v1834_v46, %v1842_v23  ;;  %v2117_v31 = vpop.permute.xlu1 %2116  ;;  %2256 = vmatpush1.bf16.msra.mxu1 %v2228_v26  ;;  %v1931_v32 = vpop.permute.xlu0 %1930  ;;  %p2743_p10 = scmp.ne.s32.totalorder %s2422_s26, %s2742_s0  ;;  %p2748_p12 = scmp.lt.s32.totalorder %s2742_s0, %s2742_s0 }
 0x42c   :  { %1897 = vst [vmem:[#allocation5 + $0x18] sm:$0xcc] %v1890_v28  ;;  %1850 = vst [vmem:[#allocation5 + $0x18] sm:$0x33] %v1843_v30  ;;  %v2120_v56 = vrot.slane %v2117_v31, 4  ;;  %v1934_v8 = vrot.slane %v1931_v32, 4 }
 0x42d   :  { %p2749_p13 = por %p2748_p12, %p2747_p11 }
 0x42e   :  { %v2123_v4 = vsel %vm577_vm7, %v2119_v27, %v2120_v56  ;;  %v2125_v34 = vsel %vm1237_vm8, %v2117_v31, %v2120_v56  ;;  %v1937_v36 = vsel %vm577_vm7, %v1933_v29, %v1934_v8  ;;  %v1939_v39 = vsel %vm861_vm0, %v1931_v32, %v1934_v8 }
 0x42f   :  { %v2124_v40 = vsel %vm1237_vm8, %v2115_v49, %v2123_v4  ;;  %2131 = vst.msk [vmem:[#allocation5 + $0x70] sm:$0x33] %vm2902_vm6, %v2125_v34  ;;  %v1938_v41 = vsel %vm861_vm0, %v1929_v61, %v1937_v36  ;;  %1945 = vst.msk [vmem:[#allocation5 + $0x40] sm:$0x33] %vm2902_vm6, %v1939_v39  ;;  %v1978_v43 = vpop.permute.xlu1 %1977  ;;  %v2024_v25 = vpop.permute.xlu0 %2023  ;;  %v2679_v46 = vld [vmem:[#allocation5 + $0x30] ss:$24 sps:$4 sm:$0xff]   ;;  %p2750_p0 = pnand %p2749_p13, %p2743_p10 }
 0x430   :  { %v2681_v48 = vld [vmem:[#allocation5 + $0x34] ss:$24 sps:$4 sm:$0xff]   ;;  %2130 = vst [vmem:[#allocation5 + $0x68] sm:$0x33] %v2124_v40  ;;  %1944 = vst [vmem:[#allocation5 + $0x38] sm:$0x33] %v1938_v41 }
 0x431   :  { %v1981_v51 = vrot.slane %v1978_v43, 4  ;;  %v2027_v1 = vrot.slane %v2024_v25, 4  ;;  %2257 = vmatprep.subr.bf16.mxu1 %v2681_v48  ;;  %vm3419_vm8 = vmmov %vm3416_vm13 }
 0x432   :  { %2258 = vmatpush1.bf16.msra.mxu1 %v2679_v46  ;;  %vm3420_vm0 = vmmov %vm3419_vm8 }
 0x433   :  { %v1984_v49 = vsel %vm577_vm7, %v1980_v52, %v1981_v51  ;;  %v1986_v27 = vsel %vm955_vm3, %v1978_v43, %v1981_v51  ;;  %v2030_v19 = vsel %vm577_vm7, %v2026_v12, %v2027_v1  ;;  %v2032_v53 = vsel %vm3419_vm8, %v2024_v25, %v2027_v1  ;;  %v2071_v24 = vpop.permute.xlu1 %2070  ;;  %v1792_v52 = vpop.permute.xlu0 %1791  ;;  %v2682_v61 = vld [vmem:[#allocation5] ss:$24 sps:$4 sm:$0xff]   ;;  %v2684_v62 = vld [vmem:[#allocation5 + $0x4] ss:$24 sps:$4 sm:$0xff]  }
 0x434   :  { %v1985_v55 = vsel %vm955_vm3, %v3281_v15, %v1984_v49  ;;  %1992 = vst.msk [vmem:[#allocation5 + $0x40] sm:$0xcc] %vm2954_vm15, %v1986_v27  ;;  %v2031_v59 = vsel %vm3420_vm0, %v2022_v38, %v2030_v19  ;;  %v2074_v63 = vrot.slane %v2071_v24, 4  ;;  %v1795_v29 = vrot.slane %v1792_v52, 4  ;;  %2259 = vmatprep.subr.bf16.mxu1 %v2684_v62  ;;  %vm3421_vm3 = vmmov %vm3415_vm11 }
 0x435   :  { %2038 = vst.msk [vmem:[#allocation5 + $0x58] sm:$0x33] %vm2902_vm6, %v2032_v53  ;;  %1991 = vst [vmem:[#allocation5 + $0x38] sm:$0xcc] %v1985_v55 }
 0x436   :  { %2037 = vst [vmem:[#allocation5 + $0x50] sm:$0x33] %v2031_v59  ;;  %v2077_v15 = vsel %vm577_vm7, %v2073_v35, %v2074_v63  ;;  %v2079_v3 = vsel %vm1143_vm10, %v2071_v24, %v2074_v63  ;;  %v1798_v5 = vsel %vm577_vm7, %v1794_v11, %v1795_v29  ;;  %v1800_v6 = vsel %vm3421_vm3, %v1792_v52, %v1795_v29  ;;  %v2147_v42 = vld [vmem:[#allocation5 + $0x70] sm:$0x33]  ;;  %vm3422_vm5 = vmmov %vm3421_vm3 }
 0x437   :  { %2260 = vmatpush1.bf16.msra.mxu1 %v2682_v61  ;;  %v2078_v38 = vsel %vm1143_vm10, %v3283_v10, %v2077_v15  ;;  %2085 = vst.msk [vmem:[#allocation5 + $0x58] sm:$0xcc] %vm2954_vm15, %v2079_v3  ;;  %v1799_v35 = vsel %vm3422_vm5, %v3285_v45, %v1798_v5  ;;  %1806 = vst.msk [vmem:[#allocation5 + $0x10] sm:$0xcc] %vm2954_vm15, %v1800_v6  ;;  %v1838_v9 = vpop.permute.xlu1 %1837  ;;  %v1885_v11 = vpop.permute.xlu0 %1884  ;;  %v2537_v58 = vcombine.high %v2147_v42, %v2147_v42  ;;  %v2146_v12 = vld [vmem:[#allocation5 + $0x68] sm:$0x33] }
 0x438   :  { %v2536_v54 = vcombine.low %v2147_v42, %v2147_v42  ;;  %2084 = vst [vmem:[#allocation5 + $0x50] sm:$0xcc] %v2078_v38  ;;  %1805 = vst [vmem:[#allocation5 + $0x8] sm:$0xcc] %v1799_v35  ;;  %v1841_v50 = vrot.slane %v1838_v9, 4  ;;  %v1888_v13 = vrot.slane %v1885_v11, 4  ;;  %v2535_v37 = vcombine.high %v2146_v12, %v2146_v12 }
 0x439   :  { %v2534_v10 = vcombine.low %v2146_v12, %v2146_v12  ;;  %2542 = vmatprep.subr.msk.bf16.mxu0 %vm66_vm2, %v2537_v58  ;;  %vm3423_vm10 = vmmov %vm3418_vm14 }
 0x43a   :  { %2539 = vmatmul.mubr.msk.bf16.vlgmr.msra.gmra.mxu1 %vm2223_vm4, %v2132_v7  ;;  %v2240_v45 = vsel %vm66_vm2, %v2536_v54, 0  ;;  %v1844_v16 = vsel %vm577_vm7, %v1840_v2, %v1841_v50  ;;  %v1846_v33 = vsel %vm3423_vm10, %v1838_v9, %v1841_v50  ;;  %v1891_v18 = vsel %vm577_vm7, %v1887_v14, %v1888_v13  ;;  %2540 = vmatprep.subr.msk.bf16.mxu1 %vm66_vm2, %v2535_v37  ;;  %vm3425_vm12 = vmmov %vm3423_vm10 }
 0x43b   :  { %v1893_v21 = vsel %vm3424_vm9, %v1885_v11, %v1888_v13  ;;  %v1845_v0 = vsel %vm3425_vm12, %v3311_v17, %v1844_v16  ;;  %1852 = vst.msk [vmem:[#allocation5 + $0x28] sm:$0x33] %vm2902_vm6, %v1846_v33  ;;  %vm3426_vm11 = vmmov %vm3417_vm1  ;;  %2338 = vmatpush1.bf16.msra.mxu0 %v2240_v45  ;;  %v2234_v2 = vsel %vm66_vm2, %v2534_v10, 0  ;;  %2318 = vmatprep.mubr.bf16.mxu1 %v3217_v44  ;;  %vm2412_vm2 = vcmask 64516  }
 0x43c   :  { %v1892_v22 = vsel %vm3426_vm11, %v3287_v47, %v1891_v18  ;;  %1899 = vst.msk [vmem:[#allocation5 + $0x28] sm:$0xcc] %vm2954_vm15, %v1893_v21  ;;  %1851 = vst [vmem:[#allocation5 + $0x20] sm:$0x33] %v1845_v0  ;;  %2297 = vmatpush1.bf16.msra.mxu1 %v2234_v2 }
 0x43d   :  { %1898 = vst [vmem:[#allocation5 + $0x20] sm:$0xcc] %v1892_v22  ;;  %vm2413_vm6 = vmor %vm2412_vm2, %vm577_vm7 }
 0x43e   :  { %v2689_v14 = vld [vmem:[#allocation5 + $0x40] ss:$24 sps:$4 sm:$0xff]   ;;  %v2691_v60 = vld [vmem:[#allocation5 + $0x44] ss:$24 sps:$4 sm:$0xff]  }
 0x43f   :  { %v2692_v17 = vld [vmem:[#allocation5 + $0x38] ss:$24 sps:$4 sm:$0xff]   ;;  %v2694_v23 = vld [vmem:[#allocation5 + $0x3c] ss:$24 sps:$4 sm:$0xff]   ;;  %2339 = vmatprep.subr.bf16.mxu0 %v2691_v60 }
 0x440   :  { %2298 = vmatprep.subr.bf16.mxu1 %v2694_v23  ;;  %2340 = vmatpush1.bf16.msra.mxu0 %v2689_v14 }
 0x441   :  { %2299 = vmatpush1.bf16.msra.mxu1 %v2692_v17 }
 0x443   :  { %v2695_v57 = vld [vmem:[#allocation5 + $0x10] ss:$24 sps:$4 sm:$0xff]   ;;  %v2697_v47 = vld [vmem:[#allocation5 + $0x14] ss:$24 sps:$4 sm:$0xff]  }
 0x444   :  { %v2698_v20 = vld [vmem:[#allocation5 + $0x8] ss:$24 sps:$4 sm:$0xff]   ;;  %v2700_v26 = vld [vmem:[#allocation5 + $0xc] ss:$24 sps:$4 sm:$0xff]   ;;  %2341 = vmatprep.subr.bf16.mxu0 %v2697_v47  ;;  %v2372_v44 = vpop.permute.xlu1 %2371  ;;  %v2384_v31 = vpop.permute.xlu0 %2383 }
 0x445   :  { %2300 = vmatprep.subr.bf16.mxu1 %v2700_v26  ;;  %2342 = vmatpush1.bf16.msra.mxu0 %v2695_v57 }
 0x446   :  { %2301 = vmatpush1.bf16.msra.mxu1 %v2698_v20 }
 0x448   :  { %2543 = vmatmul.mubr.msk.bf16.vlgmr.msra.gmra.mxu0 %vm2223_vm4, %v2132_v7 }
 0x449   :  { %2541 = vmatmul.mubr.msk.bf16.vlgmr.msra.gmra.mxu1 %vm2223_vm4, %v2132_v7 }
 0x4fa   :  { %v2279_v28 = vpop.f32.mrf.mxu1 }
 0x4fb   :  { %v2374_v30 = vmul.f32 %v2372_v44, %v2279_v28 }
 0x4fc   :  { %v2281_v32 = vpop.f32.mrf.mxu1 }
 0x4fd   :  { %v2386_v56 = vadd.f32 %v2384_v31, %v2374_v30  ;;  %v2375_v8 = vmul.f32 %v2372_v44, %v2281_v32 }
 0x4fe   :  { %v2283_v4 = vpop.f32.mrf.mxu1 }
 0x4ff   :  { %v2387_v34 = vadd.f32 %v2384_v31, %v2375_v8  ;;  %v2392_v39 = vmax.f32 %v2386_v56, 0.0 }
 0x500   :  { %v2284_v36 = vpop.f32.mrf.mxu1 }
 0x501   :  { %v2393_v40 = vmax.f32 %v2387_v34, 0.0 }
 0x503   :  { %v2404_v41 = vcombine.low %v2392_v39, %v2393_v40 }
 0x505   :  { %2410 = vst [vmem:[#allocation11] sm:$0xff] %v2404_v41 }
 0x508   :  { %v2361_v43 = vpop.f32.mrf.mxu0 }
 0x509   :  { %v2378_v25 = vmul.f32 %v2372_v44, %v2361_v43  ;;  %v2320_v46 = vpop.f32.mrf.mxu1 }
 0x50a   :  { %v2376_v48 = vmul.f32 %v2372_v44, %v2320_v46  ;;  %v2363_v51 = vpop.f32.mrf.mxu0 }
 0x50b   :  { %v2390_v1 = vadd.f32 %v2384_v31, %v2378_v25  ;;  %v2379_v49 = vmul.f32 %v2372_v44, %v2363_v51  ;;  %v2322_v27 = vpop.f32.mrf.mxu1 }
 0x50c   :  { %v2388_v19 = vadd.f32 %v2384_v31, %v2376_v48  ;;  %v2377_v53 = vmul.f32 %v2372_v44, %v2322_v27  ;;  %v2365_v55 = vpop.f32.mrf.mxu0 }
 0x50d   :  { %v2391_v59 = vadd.f32 %v2384_v31, %v2379_v49  ;;  %v2324_v24 = vpop.f32.mrf.mxu1  ;;  %v2396_v62 = vmax.f32 %v2390_v1, 0.0 }
 0x50e   :  { %v2389_v52 = vadd.f32 %v2384_v31, %v2377_v53  ;;  %v2366_v61 = vpop.f32.mrf.mxu0  ;;  %v2394_v15 = vmax.f32 %v2388_v19, 0.0 }
 0x50f   :  { %v2397_v63 = vmax.f32 %v2391_v59, 0.0  ;;  %v2325_v29 = vpop.f32.mrf.mxu1 }
 0x510   :  { %v2395_v3 = vmax.f32 %v2389_v52, 0.0 }
 0x511   :  { %v2406_v5 = vcombine.low %v2396_v62, %v2397_v63 }
 0x512   :  { %v2405_v6 = vcombine.low %v2394_v15, %v2395_v3 }
 0x513   :  { %2414 = vst.msk [vmem:[#allocation11 + $0x10] sm:$0xff] %vm2413_vm6, %v2406_v5 }
 0x514   :  { %2411 = vst [vmem:[#allocation11 + $0x8] sm:$0xff] %v2405_v6 }
 0x515   :  { %2753 = shalt.err (!%p2750_p0)
}
 0x516   :  { %2424 = dma.vmem_to_hbm [thread:$0]  %s2422_s26, 384, %s3404_s10, [#allocation8]  }
 0x517   :  { %2766 = dma.done.wait [#allocation8], 384  }
 0x518   :  { %2767 = vsyncadd [#allocation8], 4294966912 }
 0x519   :  { %2428 = vsyncpa [#allocation7], 1 }
 0x51a   :  { %2429 = vsyncpa [#allocation10], 1 }
 0x51b   :  { %2430 = vsyncpa [#allocation8], 1 }

</bundles_post_ra>
